<compile_context>
chip_gen: v6e
topology: v6e:2x2x1
jax: 0.10.0
libtpu: 0.0.40
codegen_flags: <defaults>
</compile_context>

<pallas_src>
import functools

import jax
import jax.numpy as jnp
from jax.experimental import pallas as pl
from jax.experimental.pallas import tpu as pltpu

LANE = 128


def _round_up(v, m):
    return (v + m - 1) // m * m


def _device_kind():
    try:
        return jax.devices()[0].device_kind.lower()
    except Exception:
        return ""


def _default_dw_dtype():
    kind = _device_kind()
    if "v6" in kind or "v7" in kind:
        return jnp.bfloat16           # bf16-capable VPU
    return jnp.float32                # v5e (and unknown chips): f32 taps


def _vmem_cap_bytes():
    kind = _device_kind()
    if "v7" in kind:
        return 56 << 20               # 64 MiB physical -> leave compiler headroom
    if "v6" in kind or "v5" in kind:
        return 100 << 20              # 128 MiB physical
    return 64 << 20


def _vmem_need_bytes(tile_h, H, W, K, Cin_pad, hid_pad, Cout_pad, dw_bytes, out_bytes):
    f32 = 4
    p = K // 2
    th2 = tile_h + 2 * p
    wp = W + 2 * p
    x_blk = (H + 2 * p) * W * Cin_pad * 2             # bf16 input block
    o_blk = tile_h * W * Cout_pad * out_bytes
    weights = ((Cin_pad + Cout_pad) * hid_pad * 2      # w1 / w3 (bf16)
               + K * K * hid_pad * dw_bytes            # depthwise taps
               + (2 * hid_pad + Cout_pad) * f32)       # biases
    scratch = th2 * wp * hid_pad * dw_bytes            # halo buffer
    interm = (th2 * W * hid_pad * f32                  # h1 before store
              + 3 * tile_h * W * hid_pad * f32         # two accumulators + h2
              + tile_h * W * Cout_pad * f32)           # y
    # inputs/outputs (and, by default, the constant specs) are double-buffered
    return 2 * (x_blk + o_blk + weights) + scratch + interm


def _choose_tile_h(H, W, K, Cin_pad, hid_pad, Cout_pad, dw_bytes, out_bytes, budget):
    """Largest divisor of H whose per-step VMEM footprint fits the budget."""
    best = None
    for th in range(1, H + 1):
        if H % th:
            continue
        need = _vmem_need_bytes(th, H, W, K, Cin_pad, hid_pad, Cout_pad,
                                dw_bytes, out_bytes)
        if need <= budget or best is None:
            best = th
    return best


def _inverted_residual_kernel(x_ref, w1_ref, b1_ref, wd_ref, b2_ref, w3_ref, b3_ref,
                              o_ref, hbuf, *, H, W, K, TILE_H, res_connect, dw_dtype):
    """One (image, row-tile) per grid step.  Channel dims are lane-padded."""
    p = K // 2
    TH2 = TILE_H + 2 * p
    hid = w1_ref.shape[-1]
    Cout = w3_ref.shape[-1]
    h = pl.program_id(1)
    r0 = h * TILE_H                    # tile start row in row-padded coordinates

    # --- Stage 1: 1x1 expansion conv (MXU, bf16 x bf16 -> f32) + bias + ReLU6.
    xw = x_ref[0, pl.ds(r0, TH2), :, :]                         # (TH2, W, Cin_pad)
    h1 = jnp.dot(xw.reshape(TH2 * W, xw.shape[-1]), w1_ref[...],
                 preferred_element_type=jnp.float32)
    h1 = jnp.clip(h1 + b1_ref[...], 0.0, 6.0).reshape(TH2, W, hid)

    # Halo rows outside the image must be zero in h1 space ('same' padding of
    # the depthwise conv); mask them so the Stage-1 bias does not leak in.
    prow = jax.lax.broadcasted_iota(jnp.int32, (TH2, W, hid), 0) + r0
    h1 = jnp.where((prow >= p) & (prow < H + p), h1, 0.0)

    # --- Stage 2: depthwise KxK conv, stride 1 (VPU).
    # h1 lives in a VMEM scratch ref with a zero column border; the K*K shifted
    # windows are plain strided vector loads (no concatenates, no value copies).
    if p > 0:
        zcol = jnp.zeros((TH2, p, hid), dw_dtype)
        hbuf[:, pl.ds(0, p), :] = zcol
        hbuf[:, pl.ds(p + W, p), :] = zcol
    hbuf[:, pl.ds(p, W), :] = h1.astype(dw_dtype)

    taps = wd_ref[...]                                          # (K*K, hid), load once
    acc_a = None
    acc_b = None
    for dy in range(K):
        for dx in range(K):
            t = dy * K + dx
            win = hbuf[pl.ds(dy, TILE_H), pl.ds(dx, W), :]      # (TILE_H, W, hid)
            prod = (win * taps[t]).astype(jnp.float32)
            if t % 2 == 0:
                acc_a = prod if acc_a is None else acc_a + prod
            else:
                acc_b = prod if acc_b is None else acc_b + prod
    acc = acc_a if acc_b is None else acc_a + acc_b
    h2 = jnp.clip(acc + b2_ref[...], 0.0, 6.0)                  # (TILE_H, W, hid)

    # --- Stage 3: 1x1 projection conv (MXU, bf16) + bias (+ residual).
    y = jnp.dot(h2.reshape(TILE_H * W, hid).astype(jnp.bfloat16), w3_ref[...],
                preferred_element_type=jnp.float32)
    y = y + b3_ref[...]
    if res_connect:
        xres = x_ref[0, pl.ds(r0 + p, TILE_H), :, :]            # tile rows, no halo
        y = y + xres.reshape(TILE_H * W, -1).astype(jnp.float32)
    o_ref[0] = y.reshape(TILE_H, W, Cout).astype(o_ref.dtype)


def inverted_residual(x_nchw, params, *, kernel_size, stride=1, tile_h=None,
                      dw_dtype=None):
    # TODO(synk): stride > 1 depthwise subsampling not implemented in-kernel.
    assert stride == 1
    K = kernel_size
    p = K // 2
    if dw_dtype is None:
        dw_dtype = _default_dw_dtype()

    x = jnp.transpose(x_nchw, (0, 2, 3, 1))                     # NCHW -> NHWC
    N, H, W, Cin = x.shape
    w1, s1, b1, wd, s2, b2, w3, s3, b3 = params
    hidden = w1.shape[1]
    Cout = w3.shape[1]
    res_connect = (stride == 1) and (Cin == Cout)

    Cin_pad = _round_up(Cin, LANE)
    hid_pad = _round_up(hidden, LANE)
    Cout_pad = _round_up(Cout, LANE)

    # bf16 activations + spatial row halo pad + lane-dense channel pad.
    x_p = jnp.pad(x.astype(jnp.bfloat16),
                  ((0, 0), (p, p), (0, 0), (0, Cin_pad - Cin)))

    # Fold BN scales into the conv weights offline; kernel only adds biases.
    w1f = jnp.pad(w1 * s1, ((0, Cin_pad - Cin), (0, hid_pad - hidden))
                  ).astype(jnp.bfloat16)
    b1f = jnp.pad(b1.reshape(1, -1), ((0, 0), (0, hid_pad - hidden))
                  ).astype(jnp.float32)
    wdf = jnp.pad(wd * s2, ((0, 0), (0, hid_pad - hidden))).astype(dw_dtype)
    b2f = jnp.pad(b2.reshape(1, -1), ((0, 0), (0, hid_pad - hidden))
                  ).astype(jnp.float32)
    w3f = jnp.pad(w3 * s3, ((0, hid_pad - hidden), (0, Cout_pad - Cout))
                  ).astype(jnp.bfloat16)
    b3f = jnp.pad(b3.reshape(1, -1), ((0, 0), (0, Cout_pad - Cout))
                  ).astype(jnp.float32)

    cap = _vmem_cap_bytes()
    dwb = jnp.dtype(dw_dtype).itemsize
    outb = jnp.dtype(x_nchw.dtype).itemsize
    if tile_h is None:
        tile_h = _choose_tile_h(H, W, K, Cin_pad, hid_pad, Cout_pad, dwb, outb,
                                budget=cap // 2)
    assert H % tile_h == 0, "tile_h must divide H"
    n_ht = H // tile_h
    need = _vmem_need_bytes(tile_h, H, W, K, Cin_pad, hid_pad, Cout_pad, dwb, outb)
    vmem_limit = int(min(max(int(1.4 * need), 32 << 20), cap))

    kernel = functools.partial(_inverted_residual_kernel,
                               H=H, W=W, K=K, TILE_H=tile_h,
                               res_connect=res_connect, dw_dtype=dw_dtype)

    # TODO(synk): single-buffer these constant specs (pipeline_mode) on v7x.
    const_spec = lambda shape: pl.BlockSpec(shape, lambda n, h: (0,) * len(shape))

    out = pl.pallas_call(
        kernel,
        out_shape=jax.ShapeDtypeStruct((N, H, W, Cout_pad), x_nchw.dtype),
        grid_spec=pltpu.PrefetchScalarGridSpec(
            num_scalar_prefetch=0,
            grid=(N, n_ht),
            in_specs=[
                pl.BlockSpec((1, H + 2 * p, W, Cin_pad), lambda n, h: (n, 0, 0, 0)),
                const_spec((Cin_pad, hid_pad)),     # w1 (bf16, BN-folded)
                const_spec((1, hid_pad)),           # b1
                const_spec((K * K, hid_pad)),       # wd (dw_dtype, BN-folded)
                const_spec((1, hid_pad)),           # b2
                const_spec((hid_pad, Cout_pad)),    # w3 (bf16, BN-folded)
                const_spec((1, Cout_pad)),          # b3
            ],
            out_specs=pl.BlockSpec((1, tile_h, W, Cout_pad),
                                   lambda n, h: (n, h, 0, 0)),
            scratch_shapes=[pltpu.VMEM((tile_h + 2 * p, W + 2 * p, hid_pad),
                                       dw_dtype)],
        ),
        compiler_params=pltpu.CompilerParams(
            dimension_semantics=("parallel", "parallel"),
            vmem_limit_bytes=vmem_limit),
    )(x_p, w1f, b1f, wdf, b2f, w3f, b3f)

    out = out[..., :Cout]
    return jnp.transpose(out, (0, 3, 1, 2))                     # NHWC -> NCHW


def init_params(key, in_channels, out_channels, kernel_size, expand_ratio=6.0):
    """Deterministic synthetic parameters; BN (eval mode) folded to scale/bias."""
    K = kernel_size
    hidden = int(round(in_channels * expand_ratio))
    eps = 1e-5
    ks = jax.random.split(key, 17)

    # Conv1: 1x1, in -> hidden, bias=True (+ BN + ReLU6)
    w1_raw = 0.1 * jax.random.normal(ks[0], (hidden, in_channels), jnp.float32)
    b1_conv = 0.1 * jax.random.normal(ks[1], (hidden,), jnp.float32)
    g1 = 1.0 + 0.1 * jax.random.normal(ks[2], (hidden,), jnp.float32)
    be1 = 0.1 * jax.random.normal(ks[3], (hidden,), jnp.float32)
    m1 = 0.1 * jax.random.normal(ks[4], (hidden,), jnp.float32)
    v1 = 0.5 + jnp.abs(jax.random.normal(ks[5], (hidden,), jnp.float32))

    # Conv2: depthwise KxK, groups=hidden, bias=True (+ BN + ReLU6)
    wd_raw = 0.1 * jax.random.normal(ks[6], (hidden, K, K), jnp.float32)
    bd_conv = 0.1 * jax.random.normal(ks[7], (hidden,), jnp.float32)
    g2 = 1.0 + 0.1 * jax.random.normal(ks[8], (hidden,), jnp.float32)
    be2 = 0.1 * jax.random.normal(ks[9], (hidden,), jnp.float32)
    m2 = 0.1 * jax.random.normal(ks[10], (hidden,), jnp.float32)
    v2 = 0.5 + jnp.abs(jax.random.normal(ks[11], (hidden,), jnp.float32))

    # Conv3: 1x1, hidden -> out, bias=False (+ BN, no ReLU)
    w3_raw = 0.1 * jax.random.normal(ks[12], (out_channels, hidden), jnp.float32)
    g3 = 1.0 + 0.1 * jax.random.normal(ks[13], (out_channels,), jnp.float32)
    be3 = 0.1 * jax.random.normal(ks[14], (out_channels,), jnp.float32)
    m3 = 0.1 * jax.random.normal(ks[15], (out_channels,), jnp.float32)
    v3 = 0.5 + jnp.abs(jax.random.normal(ks[16], (out_channels,), jnp.float32)) + 0.1

    s1 = g1 / jnp.sqrt(v1 + eps)
    b1 = be1 + (b1_conv - m1) * s1
    s2 = g2 / jnp.sqrt(v2 + eps)
    b2 = be2 + (bd_conv - m2) * s2
    s3 = g3 / jnp.sqrt(v3 + eps)
    b3 = be3 + (0.0 - m3) * s3

    w1 = w1_raw.T                                                 # (Cin, hidden)
    wd = jnp.transpose(wd_raw, (1, 2, 0)).reshape(K * K, hidden)  # (K*K, hidden)
    w3 = w3_raw.T                                                 # (hidden, Cout)

    return (w1, s1.reshape(1, -1), b1.reshape(1, -1),
            wd, s2.reshape(1, -1), b2.reshape(1, -1),
            w3, s3.reshape(1, -1), b3.reshape(1, -1))


def reference_nchw(x_nchw, params, *, kernel_size, dw_dtype=jnp.float32):
    """Plain-JAX reference mirroring the kernel's BN folding and dtype casts."""
    K = kernel_size
    p = K // 2
    x = jnp.transpose(x_nchw, (0, 2, 3, 1)).astype(jnp.bfloat16)
    N, H, W, Cin = x.shape
    w1, s1, b1, wd, s2, b2, w3, s3, b3 = params
    Cout = w3.shape[1]
    w1f = (w1 * s1).astype(jnp.bfloat16)
    wdf = (wd * s2).astype(dw_dtype)
    w3f = (w3 * s3).astype(jnp.bfloat16)

    h1 = jnp.einsum('nhwc,cd->nhwd', x, w1f,
                    preferred_element_type=jnp.float32) + b1
    h1 = jnp.clip(h1, 0.0, 6.0).astype(dw_dtype)
    h1p = jnp.pad(h1, ((0, 0), (p, p), (p, p), (0, 0)))
    acc = jnp.zeros((N, H, W, h1.shape[-1]), jnp.float32)
    for dy in range(K):
        for dx in range(K):
            acc = acc + (h1p[:, dy:dy + H, dx:dx + W, :]
                         * wdf[dy * K + dx]).astype(jnp.float32)
    h2 = jnp.clip(acc + b2, 0.0, 6.0)
    y = jnp.einsum('nhwd,de->nhwe', h2.astype(jnp.bfloat16), w3f,
                   preferred_element_type=jnp.float32) + b3
    if Cin == Cout:
        y = y + x.astype(jnp.float32)
    return jnp.transpose(y, (0, 3, 1, 2)).astype(x_nchw.dtype)


if __name__ == "__main__":
    key = jax.random.PRNGKey(0)
    kx, kp, kp2 = jax.random.split(key, 3)

    dw_dtype = _default_dw_dtype()

    # Case 1: residual block (Cin == Cout), explicit 2-way row tiling (halo path).
    N, Cin, H, W = 2, 8, 16, 16
    Cout, K, expand = 8, 3, 6.0
    x = jax.random.normal(kx, (N, Cin, H, W), jnp.float32)      # NCHW (PyTorch order)
    params = init_params(kp, Cin, Cout, K, expand)

    out = inverted_residual(x, params, kernel_size=K, stride=1,
                            tile_h=8, dw_dtype=dw_dtype)
    out = jax.block_until_ready(out)
    ref = reference_nchw(x, params, kernel_size=K, dw_dtype=dw_dtype)
    assert out.shape == (N, Cout, H, W)
    assert jnp.allclose(out, ref, atol=2e-2, rtol=2e-2), "mismatch (residual case)"

    # Case 2: non-residual block (Cin != Cout), auto-chosen row tile.
    Cout2 = 16
    params2 = init_params(kp2, Cin, Cout2, K, expand)
    out2 = inverted_residual(x, params2, kernel_size=K, stride=1, dw_dtype=dw_dtype)
    out2 = jax.block_until_ready(out2)
    ref2 = reference_nchw(x, params2, kernel_size=K, dw_dtype=dw_dtype)
    assert out2.shape == (N, Cout2, H, W)
    assert jnp.allclose(out2, ref2, atol=2e-2, rtol=2e-2), "mismatch (non-residual case)"

    print("KERNEL_OK")
</pallas_src>

<mosaic_0001>
module attributes {stable_mosaic.version = 11 : i64} {
  func.func @_inverted_residual_kernel(%arg0: i32, %arg1: i32, %arg2: memref<1x18x16x128xbf16, #tpu.memory_space<vmem>>, %arg3: memref<128x128xbf16, #tpu.memory_space<vmem>>, %arg4: memref<1x128xf32, #tpu.memory_space<vmem>>, %arg5: memref<9x128xf32, #tpu.memory_space<vmem>>, %arg6: memref<1x128xf32, #tpu.memory_space<vmem>>, %arg7: memref<128x128xbf16, #tpu.memory_space<vmem>>, %arg8: memref<1x128xf32, #tpu.memory_space<vmem>>, %arg9: memref<1x8x16x128xf32, #tpu.memory_space<vmem>>, %arg10: memref<10x18x128xf32, #tpu.memory_space<vmem>>) attributes {dimension_semantics = [#tpu.dimension_semantics<parallel>, #tpu.dimension_semantics<parallel>], iteration_bounds = array<i64: 2, 2>, scalar_prefetch = 0 : i64, scratch_operands = 1 : i64, tpu.core_type = #tpu.core_type<tc>, window_params = [{transform_indices = @transform_0, window_bounds = array<i64: 1, 18, 16, 128>}, {pipeline_mode = #tpu.pipeline_mode<synchronous>, transform_indices = @transform_1, window_bounds = array<i64: 128, 128>}, {pipeline_mode = #tpu.pipeline_mode<synchronous>, transform_indices = @transform_2, window_bounds = array<i64: 1, 128>}, {pipeline_mode = #tpu.pipeline_mode<synchronous>, transform_indices = @transform_3, window_bounds = array<i64: 9, 128>}, {pipeline_mode = #tpu.pipeline_mode<synchronous>, transform_indices = @transform_4, window_bounds = array<i64: 1, 128>}, {pipeline_mode = #tpu.pipeline_mode<synchronous>, transform_indices = @transform_5, window_bounds = array<i64: 128, 128>}, {pipeline_mode = #tpu.pipeline_mode<synchronous>, transform_indices = @transform_6, window_bounds = array<i64: 1, 128>}, {transform_indices = @transform_7, window_bounds = array<i64: 1, 8, 16, 128>}]} {
    %c8_i32 = arith.constant 8 : i32
    %0 = arith.muli %arg1, %c8_i32 : i32
    %c0 = arith.constant 0 : index
    %1 = arith.index_cast %0 : i32 to index
    %c0_0 = arith.constant 0 : index
    %c0_1 = arith.constant 0 : index
    %2 = vector.load %arg2[%c0, %1, %c0_0, %c0_1] : memref<1x18x16x128xbf16, #tpu.memory_space<vmem>>, vector<1x10x16x128xbf16>
    %3 = vector.shape_cast %2 : vector<1x10x16x128xbf16> to vector<10x16x128xbf16>
    %4 = vector.shape_cast %3 : vector<10x16x128xbf16> to vector<160x128xbf16>
    %c0_2 = arith.constant 0 : index
    %c0_3 = arith.constant 0 : index
    %5 = vector.load %arg3[%c0_2, %c0_3] : memref<128x128xbf16, #tpu.memory_space<vmem>>, vector<128x128xbf16>
    %cst = arith.constant dense<0.000000e+00> : vector<160x128xf32>
    %6 = tpu.matmul %4, %5, %cst {dimension_numbers = #tpu.dot_dimension_numbers<[1], [0], [0], [1], [0, 0, 1, 1], [], []>} : vector<160x128xbf16>, vector<128x128xbf16>, vector<160x128xf32> -> vector<160x128xf32>
    %c0_4 = arith.constant 0 : index
    %c0_5 = arith.constant 0 : index
    %7 = vector.load %arg4[%c0_4, %c0_5] : memref<1x128xf32, #tpu.memory_space<vmem>>, vector<1x128xf32>
    %8 = vector.broadcast %7 : vector<1x128xf32> to vector<160x128xf32>
    %9 = arith.addf %6, %8 : vector<160x128xf32>
    %cst_6 = arith.constant 0.000000e+00 : f32
    %cst_7 = arith.constant 6.000000e+00 : f32
    %10 = vector.broadcast %cst_6 : f32 to vector<160x128xf32>
    %11 = arith.maximumf %10, %9 : vector<160x128xf32>
    %12 = vector.broadcast %cst_7 : f32 to vector<160x128xf32>
    %13 = arith.minimumf %12, %11 : vector<160x128xf32>
    %14 = vector.shape_cast %13 : vector<160x128xf32> to vector<10x16x128xf32>
    %15 = tpu.iota {dimensions = array<i32: 0>} : vector<10x16x128xi32>
    %16 = vector.broadcast %0 : i32 to vector<10x16x128xi32>
    %17 = arith.addi %15, %16 : vector<10x16x128xi32>
    %c1_i32 = arith.constant 1 : i32
    %18 = vector.broadcast %c1_i32 : i32 to vector<10x16x128xi32>
    %19 = arith.cmpi sge, %17, %18 : vector<10x16x128xi32>
    %c17_i32 = arith.constant 17 : i32
    %20 = vector.broadcast %c17_i32 : i32 to vector<10x16x128xi32>
    %21 = arith.cmpi slt, %17, %20 : vector<10x16x128xi32>
    %22 = arith.andi %19, %21 : vector<10x16x128xi1>
    %cst_8 = arith.constant 0.000000e+00 : f32
    %23 = vector.broadcast %cst_8 : f32 to vector<10x16x128xf32>
    %24 = arith.select %22, %14, %23 : vector<10x16x128xi1>, vector<10x16x128xf32>
    %cst_9 = arith.constant 0.000000e+00 : f32
    %25 = vector.broadcast %cst_9 : f32 to vector<10x1x128xf32>
    %c0_10 = arith.constant 0 : index
    %c0_11 = arith.constant 0 : index
    %c0_12 = arith.constant 0 : index
    %26 = vector.load %arg10[%c0_10, %c0_11, %c0_12] : memref<10x18x128xf32, #tpu.memory_space<vmem>>, vector<10x1x128xf32>
    tpu.vector_store %arg10[%c0_10, %c0_11, %c0_12], %25 {strides = array<i32>} : memref<10x18x128xf32, #tpu.memory_space<vmem>>, vector<10x1x128xf32>,
    %c0_13 = arith.constant 0 : index
    %c17 = arith.constant 17 : index
    %c0_14 = arith.constant 0 : index
    %27 = vector.load %arg10[%c0_13, %c17, %c0_14] : memref<10x18x128xf32, #tpu.memory_space<vmem>>, vector<10x1x128xf32>
    tpu.vector_store %arg10[%c0_13, %c17, %c0_14], %25 {strides = array<i32>} : memref<10x18x128xf32, #tpu.memory_space<vmem>>, vector<10x1x128xf32>,
    %c0_15 = arith.constant 0 : index
    %c1 = arith.constant 1 : index
    %c0_16 = arith.constant 0 : index
    %28 = vector.load %arg10[%c0_15, %c1, %c0_16] : memref<10x18x128xf32, #tpu.memory_space<vmem>>, vector<10x16x128xf32>
    tpu.vector_store %arg10[%c0_15, %c1, %c0_16], %24 {strides = array<i32>} : memref<10x18x128xf32, #tpu.memory_space<vmem>>, vector<10x16x128xf32>,
    %c0_17 = arith.constant 0 : index
    %c0_18 = arith.constant 0 : index
    %29 = vector.load %arg5[%c0_17, %c0_18] : memref<9x128xf32, #tpu.memory_space<vmem>>, vector<9x128xf32>
    %c0_19 = arith.constant 0 : index
    %c0_20 = arith.constant 0 : index
    %c0_21 = arith.constant 0 : index
    %30 = vector.load %arg10[%c0_19, %c0_20, %c0_21] : memref<10x18x128xf32, #tpu.memory_space<vmem>>, vector<8x16x128xf32>
    %31 = vector.extract_strided_slice %29 {offsets = [0, 0], sizes = [1, 128], strides = [1, 1]} : vector<9x128xf32> to vector<1x128xf32>
    %32 = vector.shape_cast %31 : vector<1x128xf32> to vector<128xf32>
    %33 = vector.shape_cast %32 : vector<128xf32> to vector<1x1x128xf32>
    %34 = vector.broadcast %33 : vector<1x1x128xf32> to vector<8x16x128xf32>
    %35 = arith.mulf %30, %34 : vector<8x16x128xf32>
    %c0_22 = arith.constant 0 : index
    %c1_23 = arith.constant 1 : index
    %c0_24 = arith.constant 0 : index
    %36 = vector.load %arg10[%c0_22, %c1_23, %c0_24] : memref<10x18x128xf32, #tpu.memory_space<vmem>>, vector<8x16x128xf32>
    %37 = vector.extract_strided_slice %29 {offsets = [1, 0], sizes = [1, 128], strides = [1, 1]} : vector<9x128xf32> to vector<1x128xf32>
    %38 = vector.shape_cast %37 : vector<1x128xf32> to vector<128xf32>
    %39 = vector.shape_cast %38 : vector<128xf32> to vector<1x1x128xf32>
    %40 = vector.broadcast %39 : vector<1x1x128xf32> to vector<8x16x128xf32>
    %41 = arith.mulf %36, %40 : vector<8x16x128xf32>
    %c0_25 = arith.constant 0 : index
    %c2 = arith.constant 2 : index
    %c0_26 = arith.constant 0 : index
    %42 = vector.load %arg10[%c0_25, %c2, %c0_26] : memref<10x18x128xf32, #tpu.memory_space<vmem>>, vector<8x16x128xf32>
    %43 = vector.extract_strided_slice %29 {offsets = [2, 0], sizes = [1, 128], strides = [1, 1]} : vector<9x128xf32> to vector<1x128xf32>
    %44 = vector.shape_cast %43 : vector<1x128xf32> to vector<128xf32>
    %45 = vector.shape_cast %44 : vector<128xf32> to vector<1x1x128xf32>
    %46 = vector.broadcast %45 : vector<1x1x128xf32> to vector<8x16x128xf32>
    %47 = arith.mulf %42, %46 : vector<8x16x128xf32>
    %48 = arith.addf %35, %47 : vector<8x16x128xf32>
    %c1_27 = arith.constant 1 : index
    %c0_28 = arith.constant 0 : index
    %c0_29 = arith.constant 0 : index
    %49 = vector.load %arg10[%c1_27, %c0_28, %c0_29] : memref<10x18x128xf32, #tpu.memory_space<vmem>>, vector<8x16x128xf32>
    %50 = vector.extract_strided_slice %29 {offsets = [3, 0], sizes = [1, 128], strides = [1, 1]} : vector<9x128xf32> to vector<1x128xf32>
    %51 = vector.shape_cast %50 : vector<1x128xf32> to vector<128xf32>
    %52 = vector.shape_cast %51 : vector<128xf32> to vector<1x1x128xf32>
    %53 = vector.broadcast %52 : vector<1x1x128xf32> to vector<8x16x128xf32>
    %54 = arith.mulf %49, %53 : vector<8x16x128xf32>
    %55 = arith.addf %41, %54 : vector<8x16x128xf32>
    %c1_30 = arith.constant 1 : index
    %c1_31 = arith.constant 1 : index
    %c0_32 = arith.constant 0 : index
    %56 = vector.load %arg10[%c1_30, %c1_31, %c0_32] : memref<10x18x128xf32, #tpu.memory_space<vmem>>, vector<8x16x128xf32>
    %57 = vector.extract_strided_slice %29 {offsets = [4, 0], sizes = [1, 128], strides = [1, 1]} : vector<9x128xf32> to vector<1x128xf32>
    %58 = vector.shape_cast %57 : vector<1x128xf32> to vector<128xf32>
    %59 = vector.shape_cast %58 : vector<128xf32> to vector<1x1x128xf32>
    %60 = vector.broadcast %59 : vector<1x1x128xf32> to vector<8x16x128xf32>
    %61 = arith.mulf %56, %60 : vector<8x16x128xf32>
    %62 = arith.addf %48, %61 : vector<8x16x128xf32>
    %c1_33 = arith.constant 1 : index
    %c2_34 = arith.constant 2 : index
    %c0_35 = arith.constant 0 : index
    %63 = vector.load %arg10[%c1_33, %c2_34, %c0_35] : memref<10x18x128xf32, #tpu.memory_space<vmem>>, vector<8x16x128xf32>
    %64 = vector.extract_strided_slice %29 {offsets = [5, 0], sizes = [1, 128], strides = [1, 1]} : vector<9x128xf32> to vector<1x128xf32>
    %65 = vector.shape_cast %64 : vector<1x128xf32> to vector<128xf32>
    %66 = vector.shape_cast %65 : vector<128xf32> to vector<1x1x128xf32>
    %67 = vector.broadcast %66 : vector<1x1x128xf32> to vector<8x16x128xf32>
    %68 = arith.mulf %63, %67 : vector<8x16x128xf32>
    %69 = arith.addf %55, %68 : vector<8x16x128xf32>
    %c2_36 = arith.constant 2 : index
    %c0_37 = arith.constant 0 : index
    %c0_38 = arith.constant 0 : index
    %70 = vector.load %arg10[%c2_36, %c0_37, %c0_38] : memref<10x18x128xf32, #tpu.memory_space<vmem>>, vector<8x16x128xf32>
    %71 = vector.extract_strided_slice %29 {offsets = [6, 0], sizes = [1, 128], strides = [1, 1]} : vector<9x128xf32> to vector<1x128xf32>
    %72 = vector.shape_cast %71 : vector<1x128xf32> to vector<128xf32>
    %73 = vector.shape_cast %72 : vector<128xf32> to vector<1x1x128xf32>
    %74 = vector.broadcast %73 : vector<1x1x128xf32> to vector<8x16x128xf32>
    %75 = arith.mulf %70, %74 : vector<8x16x128xf32>
    %76 = arith.addf %62, %75 : vector<8x16x128xf32>
    %c2_39 = arith.constant 2 : index
    %c1_40 = arith.constant 1 : index
    %c0_41 = arith.constant 0 : index
    %77 = vector.load %arg10[%c2_39, %c1_40, %c0_41] : memref<10x18x128xf32, #tpu.memory_space<vmem>>, vector<8x16x128xf32>
    %78 = vector.extract_strided_slice %29 {offsets = [7, 0], sizes = [1, 128], strides = [1, 1]} : vector<9x128xf32> to vector<1x128xf32>
    %79 = vector.shape_cast %78 : vector<1x128xf32> to vector<128xf32>
    %80 = vector.shape_cast %79 : vector<128xf32> to vector<1x1x128xf32>
    %81 = vector.broadcast %80 : vector<1x1x128xf32> to vector<8x16x128xf32>
    %82 = arith.mulf %77, %81 : vector<8x16x128xf32>
    %83 = arith.addf %69, %82 : vector<8x16x128xf32>
    %c2_42 = arith.constant 2 : index
    %c2_43 = arith.constant 2 : index
    %c0_44 = arith.constant 0 : index
    %84 = vector.load %arg10[%c2_42, %c2_43, %c0_44] : memref<10x18x128xf32, #tpu.memory_space<vmem>>, vector<8x16x128xf32>
    %85 = vector.extract_strided_slice %29 {offsets = [8, 0], sizes = [1, 128], strides = [1, 1]} : vector<9x128xf32> to vector<1x128xf32>
    %86 = vector.shape_cast %85 : vector<1x128xf32> to vector<128xf32>
    %87 = vector.shape_cast %86 : vector<128xf32> to vector<1x1x128xf32>
    %88 = vector.broadcast %87 : vector<1x1x128xf32> to vector<8x16x128xf32>
    %89 = arith.mulf %84, %88 : vector<8x16x128xf32>
    %90 = arith.addf %76, %89 : vector<8x16x128xf32>
    %91 = arith.addf %90, %83 : vector<8x16x128xf32>
    %c0_45 = arith.constant 0 : index
    %c0_46 = arith.constant 0 : index
    %92 = vector.load %arg6[%c0_45, %c0_46] : memref<1x128xf32, #tpu.memory_space<vmem>>, vector<1x128xf32>
    %93 = vector.shape_cast %92 : vector<1x128xf32> to vector<1x1x128xf32>
    %94 = vector.broadcast %93 : vector<1x1x128xf32> to vector<8x16x128xf32>
    %95 = arith.addf %91, %94 : vector<8x16x128xf32>
    %cst_47 = arith.constant 0.000000e+00 : f32
    %cst_48 = arith.constant 6.000000e+00 : f32
    %96 = vector.broadcast %cst_47 : f32 to vector<8x16x128xf32>
    %97 = arith.maximumf %96, %95 : vector<8x16x128xf32>
    %98 = vector.broadcast %cst_48 : f32 to vector<8x16x128xf32>
    %99 = arith.minimumf %98, %97 : vector<8x16x128xf32>
    %100 = vector.shape_cast %99 : vector<8x16x128xf32> to vector<128x128xf32>
    %101 = arith.truncf %100 : vector<128x128xf32> to vector<128x128xbf16>
    %c0_49 = arith.constant 0 : index
    %c0_50 = arith.constant 0 : index
    %102 = vector.load %arg7[%c0_49, %c0_50] : memref<128x128xbf16, #tpu.memory_space<vmem>>, vector<128x128xbf16>
    %cst_51 = arith.constant dense<0.000000e+00> : vector<128x128xf32>
    %103 = tpu.matmul %101, %102, %cst_51 {dimension_numbers = #tpu.dot_dimension_numbers<[1], [0], [0], [1], [0, 0, 1, 1], [], []>} : vector<128x128xbf16>, vector<128x128xbf16>, vector<128x128xf32> -> vector<128x128xf32>
    %c0_52 = arith.constant 0 : index
    %c0_53 = arith.constant 0 : index
    %104 = vector.load %arg8[%c0_52, %c0_53] : memref<1x128xf32, #tpu.memory_space<vmem>>, vector<1x128xf32>
    %105 = vector.broadcast %104 : vector<1x128xf32> to vector<128x128xf32>
    %106 = arith.addf %103, %105 : vector<128x128xf32>
    %c1_i32_54 = arith.constant 1 : i32
    %107 = arith.addi %0, %c1_i32_54 : i32
    %c0_55 = arith.constant 0 : index
    %108 = arith.index_cast %107 : i32 to index
    %c0_56 = arith.constant 0 : index
    %c0_57 = arith.constant 0 : index
    %109 = vector.load %arg2[%c0_55, %108, %c0_56, %c0_57] : memref<1x18x16x128xbf16, #tpu.memory_space<vmem>>, vector<1x8x16x128xbf16>
    %110 = vector.shape_cast %109 : vector<1x8x16x128xbf16> to vector<8x16x128xbf16>
    %111 = vector.shape_cast %110 : vector<8x16x128xbf16> to vector<128x128xbf16>
    %112 = arith.extf %111 : vector<128x128xbf16> to vector<128x128xf32>
    %113 = arith.addf %106, %112 : vector<128x128xf32>
    %114 = vector.shape_cast %113 : vector<128x128xf32> to vector<8x16x128xf32>
    %c0_58 = arith.constant 0 : index
    %c0_59 = arith.constant 0 : index
    %c0_60 = arith.constant 0 : index
    %c0_61 = arith.constant 0 : index
    %115 = vector.load %arg9[%c0_58, %c0_59, %c0_60, %c0_61] : memref<1x8x16x128xf32, #tpu.memory_space<vmem>>, vector<1x8x16x128xf32>
    %116 = vector.shape_cast %115 : vector<1x8x16x128xf32> to vector<8x16x128xf32>
    %117 = vector.shape_cast %114 : vector<8x16x128xf32> to vector<1x8x16x128xf32>
    tpu.vector_store %arg9[%c0_58, %c0_59, %c0_60, %c0_61], %117 {strides = array<i32>} : memref<1x8x16x128xf32, #tpu.memory_space<vmem>>, vector<1x8x16x128xf32>,
    return
  }
  func.func @transform_0(%arg0: i32, %arg1: i32) -> (i32, i32, i32, i32) {
    %c0_i32 = arith.constant 0 : i32
    %c0_i32_0 = arith.constant 0 : i32
    %c0_i32_1 = arith.constant 0 : i32
    %c0_i32_2 = arith.constant 0 : i32
    return %arg0, %c0_i32, %c0_i32_0, %c0_i32_1 : i32, i32, i32, i32
  }
  func.func @transform_1(%arg0: i32, %arg1: i32) -> (i32, i32) {
    %c0_i32 = arith.constant 0 : i32
    %c0_i32_0 = arith.constant 0 : i32
    %c0_i32_1 = arith.constant 0 : i32
    return %c0_i32, %c0_i32_0 : i32, i32
  }
  func.func @transform_2(%arg0: i32, %arg1: i32) -> (i32, i32) {
    %c0_i32 = arith.constant 0 : i32
    %c0_i32_0 = arith.constant 0 : i32
    %c0_i32_1 = arith.constant 0 : i32
    return %c0_i32, %c0_i32_0 : i32, i32
  }
  func.func @transform_3(%arg0: i32, %arg1: i32) -> (i32, i32) {
    %c0_i32 = arith.constant 0 : i32
    %c0_i32_0 = arith.constant 0 : i32
    %c0_i32_1 = arith.constant 0 : i32
    return %c0_i32, %c0_i32_0 : i32, i32
  }
  func.func @transform_4(%arg0: i32, %arg1: i32) -> (i32, i32) {
    %c0_i32 = arith.constant 0 : i32
    %c0_i32_0 = arith.constant 0 : i32
    %c0_i32_1 = arith.constant 0 : i32
    return %c0_i32, %c0_i32_0 : i32, i32
  }
  func.func @transform_5(%arg0: i32, %arg1: i32) -> (i32, i32) {
    %c0_i32 = arith.constant 0 : i32
    %c0_i32_0 = arith.constant 0 : i32
    %c0_i32_1 = arith.constant 0 : i32
    return %c0_i32, %c0_i32_0 : i32, i32
  }
  func.func @transform_6(%arg0: i32, %arg1: i32) -> (i32, i32) {
    %c0_i32 = arith.constant 0 : i32
    %c0_i32_0 = arith.constant 0 : i32
    %c0_i32_1 = arith.constant 0 : i32
    return %c0_i32, %c0_i32_0 : i32, i32
  }
  func.func @transform_7(%arg0: i32, %arg1: i32) -> (i32, i32, i32, i32) {
    %c0_i32 = arith.constant 0 : i32
    %c0_i32_0 = arith.constant 0 : i32
    %c0_i32_1 = arith.constant 0 : i32
    return %arg0, %arg1, %c0_i32, %c0_i32_0 : i32, i32, i32, i32
  }
}

</mosaic_0001>

<bundles_post_ra>
// kernel: tpu_custom_call.1
= control target key start
LH: loop header
LB: loop body
LE: loop exit
PB: predicated region body
PF: predicated region fallthrough
CT: control target
= control target key end

     0   :  { %s3249_s0 = inlined_call_operand.hbm [shape: bf16[2,18,16,128], index: 0, kind: input, shape index: {}]   ;;  %s3250_s1 = inlined_call_operand.hbm [shape: bf16[128,128], index: 1, kind: input, shape index: {}]   ;;  %s3251_s2 = inlined_call_operand.vmem [shape: f32[1,128], index: 2, kind: input, shape index: {}]   ;;  %s3252_s3 = inlined_call_operand.hbm [shape: f32[9,128], index: 3, kind: input, shape index: {}]   ;;  %s3253_s4 = inlined_call_operand.vmem [shape: f32[1,128], index: 4, kind: input, shape index: {}]   ;;  %s3254_s5 = inlined_call_operand.hbm [shape: bf16[128,128], index: 5, kind: input, shape index: {}]   ;;  %s3255_s6 = inlined_call_operand.vmem [shape: f32[1,128], index: 6, kind: input, shape index: {}]   ;;  %s3256_s7 = inlined_call_operand.hbm [shape: f32[2,16,16,128], index: 7, kind: output, shape index: {}]  }
   0x1   :  { %3268 = sst [smem:[#allocation23_spill]] %s3250_s1 }
   0x2   :  { %3269 = sst [smem:[#allocation24_spill]] %s3252_s3 }
   0x3   :  { %3270 = sst [smem:[#allocation25_spill]] %s3254_s5 }
   0x4   :  { %3271 = sst [smem:[#allocation26_spill]] %s3256_s7 }
   0x5   :  { %12 = vsyncpa [#allocation4], 0 }
   0x6   :  { %14 = vsyncpa [#allocation4 + $0x1], 0 }
   0x7   :  { %15 = vsyncpa [#allocation7], 0 }
   0x8   :  { %16 = vsyncpa [#allocation10], 0 }
   0x9   :  { %17 = vsyncpa [#allocation5], 0 }
   0xa   :  { %19 = vsyncpa [#allocation5 + $0x1], 0  ;;  %s2333_s24 = smov 0   ;;  %s2335_s25 = smov 0  }
   0xb   :  { %s2337_s26 = smov 0   ;;  %s2339_s27 = smov 0  }
   0xc   :  { %s2341_s28 = smov 0   ;;  %s2343_s29 = smov 0  }
   0xd   :  { %s2345_s30 = smov 0   ;;  %s2347_s8 = smov 0  }
   0xe   :  { %s2349_s9 = smov 0   ;;  %s2351_s10 = smov 0  }
   0xf   :  { %s2353_s11 = smov 0  }
  0x10 LB: > { %3272 = sst [smem:[#allocation16_spill]] %s2239_s24  ;;  %s1659_s12 = sadd.s32 4294967295, %s2279_s11   ;;  %s2279_s11 = sphi %s2353_s11, %s25_s11   ;;  %s2275_s10 = sphi %s2351_s10, %s3330_s10   ;;  %s2271_s9 = sphi %s2349_s9, %s3321_s9   ;;  %s2267_s8 = sphi %s2347_s8, %s3329_s8   ;;  %s2263_s30 = sphi %s2345_s30, %s3320_s30   ;;  %s2259_s29 = sphi %s2343_s29, %s3328_s29   ;;  %s2255_s28 = sphi %s2341_s28, %s3327_s28   ;;  %s2251_s27 = sphi %s2339_s27, %s3326_s27   ;;  %s2247_s26 = sphi %s2337_s26, %s3325_s26   ;;  %s2243_s25 = sphi %s2335_s25, %s3324_s25   ;;  %s2239_s24 = sphi %s2333_s24, %s3323_s24  }
  0x11   : > { %3273 = sst [smem:[#allocation17_spill]] %s2267_s8  ;;  %s1660_s13 = sadd.s32 4294967294, %s2279_s11  }
  0x12   : > { %3274 = sst [smem:[#allocation18_spill]] %s2271_s9  ;;  %p57_p0 = scmp.ne.s32.totalorder %s2255_s28, %s2251_s27 }
  0x13   : > { %p2389_p1 = scmp.eq.s32.totalorder %s1659_s12, 0  ;;  %p208_p2 = scmp.ne.s32.totalorder %s2247_s26, %s2243_s25 }
  0x14   : > { %p209_p4 = scmp.eq.s32.totalorder %s1659_s12, 3  ;;  %p214_p5 = scmp.ne.s32.totalorder %s2243_s25, %s2239_s24 }
  0x15   : > { %p2398_p3 = por %p2389_p1, %p57_p0  ;;  %p215_p6 = scmp.eq.s32.totalorder %s1660_s13, 3 }
  0x16   : > { %p2404_p7 = por %p209_p4, %p208_p2  ;;  %p1661_p8 = scmp.ge.s32.totalorder %s2279_s11, 1 }
  0x17   : > { %p2409_p9 = por %p215_p6, %p214_p5  ;;  %p222_p10 = scmp.lt.s32.totalorder %s2279_s11, 5 }
  0x18   : > { %s3277_s17 = scalar_select %p2404_p7, 1, 0 }
  0x19   : > { %s3279_s18 = scalar_select %p2409_p9, 1, 0 }
  0x1a   : > { %3278 = sst [smem:[#allocation19_spill]] %s3277_s17  ;;  %p2414_p11 = pnand %p1661_p8, %p222_p10 }
  0x1b   : > { %3280 = sst [smem:[#allocation20_spill]] %s3279_s18  ;;  %s2281_s20 = smov [#allocation6]  }
  0x1c   : > { %s234_s21 = sshll.u32 %s2281_s20, 4  ;;  %p1895_p12 = pneg %p2414_p11  ;;  %s235_s21 = int_to_ptr.vmem [resolvable:$true] %s234_s21 }
  0x1d   : > { %s2282_s23 = smov [#allocation8]   ;;  %s2056_s12 = scalar_lea.vmem %s235_s21, 1024 }
  0x1e   : > { %p2422_p13 = pnand %p1895_p12, %p2389_p1  ;;  %s250_s27 = sshll.u32 %s2282_s23, 4  ;;  %s251_s27 = int_to_ptr.vmem [resolvable:$true] %s250_s27 }
  0x1f   : > { %p2057_p2 = scmp.ne.s32.totalorder %s235_s21, %s2056_s12  ;;  %p2064_p6 = scmp.lt.s32.totalorder %s235_s21, %s235_s21 }
  0x20   : > { %p2047_p0 = pneg %p2422_p13  ;;  %p2065_p8 = scmp.lt.s32.totalorder %s2056_s12, %s2056_s12 }
  0x22   : > { %p2059_p4 = pnand %p2057_p2, %p2047_p0  ;;  %p2066_p10 = por %p2065_p8, %p2064_p6 }
  0x24   : > { %p2060_p5 = pneg %p2059_p4 }
  0x26   : > { %p2067_p12 = pnand %p2066_p10, %p2060_p5 }
  0x28   : > { %2070 = shalt.err (!%p2067_p12)
}
  0x29   : > { %s3262_s13 = smov 64   ;;  %s3263_s20 = smov 4  }
  0x2a   : > { %s3283_s1 = sld [smem:[#allocation23_spill]]  ;;  %s2082_s18 = scalar_lea.vmem %s251_s27, 256 }
  0x2b   : > { %p2083_p2 = scmp.ne.s32.totalorder %s251_s27, %s2082_s18  ;;  %p2090_p5 = scmp.lt.s32.totalorder %s251_s27, %s251_s27 }
  0x2c   : > { %p2091_p8 = scmp.lt.s32.totalorder %s2082_s18, %s2082_s18 }
  0x2d   : > { %p2085_p4 = pnand %p2083_p2, %p2047_p0 }
  0x2e   : > { %p2092_p10 = por %p2091_p8, %p2090_p5 }
  0x2f   : > { %p2086_p6 = pneg %p2085_p4 }
  0x30   : > { %1898 = dma.hbm_to_vmem [thread:$0]  (!%p2422_p13), %s3283_s1, 1024, %s235_s21, [#allocation7], %s3262_s13, %s3262_s13, %s3263_s20  }
  0x31   : > { %p2093_p12 = pnand %p2092_p10, %p2086_p6 }
  0x33   : > { %2096 = shalt.err (!%p2093_p12)
}
  0x34   : > { %s2285_s12 = smov 128   ;;  %s2286_s24 = smov 8  }
  0x35   : > { %s3284_s3 = sld [smem:[#allocation24_spill]]  ;;  %s2287_s15 = smov [#allocation9]  }
  0x36   : > { %s266_s21 = sshll.u32 %s2287_s15, 4  ;;  %s267_s21 = int_to_ptr.vmem [resolvable:$true] %s266_s21 }
  0x37   : > { %s2108_s23 = scalar_lea.vmem %s267_s21, 1024  ;;  %p2116_p6 = scmp.lt.s32.totalorder %s267_s21, %s267_s21 }
  0x38   : > { %p2109_p2 = scmp.ne.s32.totalorder %s267_s21, %s2108_s23  ;;  %p2117_p8 = scmp.lt.s32.totalorder %s2108_s23, %s2108_s23 }
  0x3a   : > { %p2111_p4 = pnand %p2109_p2, %p2047_p0  ;;  %p2118_p10 = por %p2117_p8, %p2116_p6 }
  0x3b   : > { %1901 = dma.hbm_to_vmem [thread:$0]  (!%p2422_p13), %s3284_s3, 256, %s251_s27, [#allocation7], %s2285_s12, %s2285_s12, %s2286_s24  }
  0x3c   : > { %p2112_p5 = pneg %p2111_p4 }
  0x3e   : > { %p2119_p12 = pnand %p2118_p10, %p2112_p5 }
  0x40   : > { %2122 = shalt.err (!%p2119_p12)
}
  0x41   : > { %s3285_s5 = sld [smem:[#allocation25_spill]]  ;;  %s34_s17 = sadd.s32 1, %s2271_s9 }
  0x42   : > { %p35_p0 = scmp.ge.s32.totalorder %s34_s17, 2  ;;  %s37_s18 = sadd.s32 1, %s2275_s10 }
  0x43   : > { %s44_s22 = sadd.s32 1, %s2259_s29  ;;  %p51_p2 = scmp.ne.s32.totalorder %s2259_s29, %s2255_s28 }
  0x44   : > { %s3332_s17 = smov (%p35_p0, %s34_s17), 0  ;;  %s3334_s18 = smov (!%p35_p0, %s37_s18), %s2275_s10 }
  0x45   : > { %3286 = sst [smem:[#allocation21_spill]] %s3332_s17  ;;  %p52_p4 = scmp.eq.s32.totalorder %s2279_s11, 0 }
  0x46   : > { %s194_s27 = ssub.s32 %s2271_s9, %s3332_s17  ;;  %p39_p5 = scmp.ge.s32.totalorder %s3334_s18, 2 }
  0x47   : > { %1904 = dma.hbm_to_vmem [thread:$0]  (!%p2422_p13), %s3285_s5, 1024, %s267_s21, [#allocation10], %s3262_s13, %s3262_s13, %s3263_s20  }
  0x48   : > { %p1916_p6 = scmp.lt.s32.totalorder %s2279_s11, 4  ;;  %p2470_p13 = por %p52_p4, %p51_p2 }
  0x49   : > { %s283_s15 = sand.u32 1, %s2259_s29   ;;  %s3336_s18 = smov (%p39_p5, %s3334_s18), 0 }
  0x4a   : > { %3288 = sst [smem:[#allocation22_spill]] %s3336_s18  ;;  %s1876_s21 = smul.u32 144, %s283_s15 }
  0x4b   : > { %s41_s23 = ssub.s32 %s2275_s10, %s3336_s18  ;;  %s1877_s7 = smul.u32 2304, %s2275_s10 }
  0x4c   : > { %p42_p8 = scmp.eq.s32.totalorder %s41_s23, 0  ;;  %s195_s24 = sor.u32 %s194_s27, %s41_s23 }
  0x4d   : > { %p196_p10 = scmp.eq.s32.totalorder %s195_s24, 0  ;;  %s3289_s20 = sadd.s32 1, %s2247_s26 }
  0x4e   : > { %s2481_s13 = scalar_select %p42_p8, %s2259_s29, %s44_s22  }
  0x4f   : > { %s2486_s1 = scalar_select %p196_p10, %s2247_s26, %s3289_s20  }
  0x50   : > { %s293_s17 = scalar_lea.hbm %s3249_s0, %s1877_s7  ;;  %s287_s9 = scalar_lea.vmem [#allocation3], %s1876_s21 }
  0x51   : > { %s294_s8 = sshll.u32 %s287_s9, 4  ;;  %p2495_p12 = pnand %p1916_p6, %p2470_p13  ;;  %s295_s8 = int_to_ptr.vmem [resolvable:$true] %s294_s8 }
  0x52   : > { %s284_s27 = scalar_lea.sflag [#allocation4], %s283_s15  ;;  %s2136_s22 = scalar_lea.vmem %s295_s8, 2304 }
  0x53   : > { %p2125_p0 = pneg %p2495_p12  ;;  %p2137_p2 = scmp.ne.s32.totalorder %s295_s8, %s2136_s22 }
  0x54   : > { %s2288_s20 = smov [#allocation3]  }
  0x55   : > { %p2139_p4 = pnand %p2137_p2, %p2125_p0  ;;  %s2141_s3 = sshll.u32 %s2288_s20, 4  ;;  %s2142_s3 = int_to_ptr.vmem [resolvable:$false] %s2141_s3 }
  0x56   : > { %s2143_s5 = scalar_lea.vmem %s2142_s3, 4608  ;;  %p2144_p8 = scmp.lt.s32.totalorder %s295_s8, %s2142_s3 }
  0x57   : > { %p2140_p5 = pneg %p2139_p4  ;;  %p2145_p10 = scmp.lt.s32.totalorder %s2143_s5, %s2136_s22 }
  0x59   : > { %p2146_p9 = por %p2145_p10, %p2144_p8 }
  0x5b   : > { %p2147_p7 = pnand %p2146_p9, %p2140_p5 }
  0x5d   : > { %2150 = shalt.err (!%p2147_p7)
}
  0x5e   : > { %s3291_s9 = smov 4   ;;  %s3292_s12 = smov 64  }
  0x5f   : > { %1908 = dma.hbm_to_vmem [thread:$0]  (!%p2495_p12), %s293_s17, 2304, %s295_s8, %s284_s27, %s3292_s12, %s3292_s12, %s3291_s9  }
  0x60   : > { %306 = sbr.rel (%p2414_p11) target bundleno = 669 (0x29d), region = 48  ;;  %s308_s15 = sand.u32 (!%p2414_p11), 1, %s2255_s28  }
  0x61   : > { %s1878_s21 = smul.u32 (!%p2414_p11), 144, %s308_s15  ;;  %s309_s23 = scalar_lea.sflag (!%p2414_p11), [#allocation4], %s308_s15 }
  0x63   : > { %s312_s7 = scalar_lea.vmem (!%p2414_p11), [#allocation3], %s1878_s21 }
  0x65   : > { %2222 = dma.done.wait (%p2398_p3), %s309_s23, 2304  }
  0x66   : > { %2224 = vsyncadd (%p2398_p3), %s309_s23, 4294964992 }
  0x67   : > { %2226 = dma.done.wait (%p2389_p1), [#allocation7], 1280  }
  0x68   : > { %2228 = vsyncadd (%p2389_p1), [#allocation7], 4294966016 }
  0x69   : > { %2230 = dma.done.wait (%p2389_p1), [#allocation10], 1024  }
  0x6a   : > { %2232 = vsyncadd (%p2389_p1), [#allocation10], 4294966272  ;;  %v2019_v0 = vld [vmem:[#allocation6 + $0x38] sm:$0xff]   ;;  %v2020_v1 = vld [vmem:[#allocation6 + $0x30] sm:$0xff]   ;;  %s1731_s8 = sshll.u32 %s2263_s30, 6  ;;  %v2289_v18 = vmov 0.0   ;;  %v783_v27 = vlaneseq }
  0x6b   : > { %1808 = vmatprep.subr.bf16.mxu0 %v2019_v0  ;;  %v2021_v2 = vld [vmem:[#allocation6 + $0x28] sm:$0xff]   ;;  %s2522_s16 = scalar_lea.vmem %s312_s7, %s1731_s8 [#allocation3]  ;;  %v2022_v3 = vld [vmem:[#allocation6 + $0x20] sm:$0xff]   ;;  %v2023_v5 = vld [vmem:[#allocation6 + $0x18] sm:$0xff]   ;;  %725 = vst [vmem:[#allocation2] sm:$0x1] %v2289_v18  ;;  %s1672_s14 = sshll.u32 %s2263_s30, 3 }
  0x6c   : > { %1809 = vmatpush3.bf16.msra.mxu0 %v2019_v0  ;;  %v2027_v4 = vld [vmem:[%s2522_s16] sm:$0xff]   ;;  %v2025_v7 = vld [vmem:[#allocation6 + $0x8] sm:$0xff]   ;;  %v2026_v8 = vld [vmem:[#allocation6] sm:$0xff]   ;;  %726 = vst [vmem:[#allocation2 + $0x18] sm:$0x1] %v2289_v18  ;;  %v2535_v28 = vstv %s1672_s14  ;;  %v784_v29 = vshrl.u32 %v783_v27, 7 }
  0x6d   : > { %1810 = vmatprep.subr.bf16.mxu0 %v2020_v1  ;;  %1824 = vmatprep.mubr.bf16.mxu0 %v2027_v4  ;;  %v2024_v6 = vld [vmem:[#allocation6 + $0x10] sm:$0xff]   ;;  %v2028_v9 = vld [vmem:[%s2522_s16 + $0x8] sm:$0xff]   ;;  %v2029_v10 = vld [vmem:[%s2522_s16 + $0x10] sm:$0xff]   ;;  %727 = vst [vmem:[#allocation2 + $0x30] sm:$0x1] %v2289_v18  ;;  %v666_v30 = vadd.s32 1, %v2535_v28 }
  0x6e   : > { %v2030_v11 = vld [vmem:[%s2522_s16 + $0x18] sm:$0xff]   ;;  %v2031_v12 = vld [vmem:[%s2522_s16 + $0x20] sm:$0xff]   ;;  %v2032_v13 = vld [vmem:[%s2522_s16 + $0x28] sm:$0xff]   ;;  %735 = vst [vmem:[#allocation2 + $0x11] sm:$0x1] %v2289_v18  ;;  %v821_v31 = vsub.s32 1, %v784_v29 }
  0x6f   : > { %v2033_v14 = vld [vmem:[%s2522_s16 + $0x30] sm:$0xff]   ;;  %v2034_v15 = vld [vmem:[%s2522_s16 + $0x38] sm:$0xff]   ;;  %v2035_v16 = vld [vmem:[%s2522_s16 + $0x40] sm:$0xff]   ;;  %736 = vst [vmem:[#allocation2 + $0x29] sm:$0x1] %v2289_v18  ;;  %v962_v32 = vsub.s32 4, %v784_v29 }
  0x70   : > { %1811 = vmatpush3.bf16.msra.mxu0 %v2020_v1  ;;  %v2036_v17 = vld [vmem:[%s2522_s16 + $0x48] sm:$0xff]   ;;  %737 = vst [vmem:[#allocation2 + $0x41] sm:$0x1] %v2289_v18  ;;  %728 = vst [vmem:[#allocation2 + $0x48] sm:$0x1] %v2289_v18  ;;  %v2037_v19 = vld [vmem:[#allocation9 + $0x38] sm:$0xff]  }
  0x71   : > { %1812 = vmatprep.subr.bf16.mxu0 %v2021_v2  ;;  %729 = vst [vmem:[#allocation2 + $0x60] sm:$0x1] %v2289_v18  ;;  %730 = vst [vmem:[#allocation2 + $0x78] sm:$0x1] %v2289_v18  ;;  %1844 = vmatprep.subr.bf16.mxu1 %v2037_v19  ;;  %v2038_v20 = vld [vmem:[#allocation9 + $0x30] sm:$0xff]   ;;  %v2039_v21 = vld [vmem:[#allocation9 + $0x28] sm:$0xff]  }
  0x72   : > { %731 = vst [vmem:[#allocation2 + $0x90] sm:$0x1] %v2289_v18  ;;  %732 = vst [vmem:[#allocation2 + $0xa8] sm:$0x1] %v2289_v18  ;;  %1845 = vmatpush3.bf16.msra.mxu1 %v2037_v19  ;;  %v2040_v22 = vld [vmem:[#allocation9 + $0x20] sm:$0xff]   ;;  %v2041_v23 = vld [vmem:[#allocation9 + $0x18] sm:$0xff]  }
  0x73   : > { %733 = vst [vmem:[#allocation2 + $0xc0] sm:$0x1] %v2289_v18  ;;  %734 = vst [vmem:[#allocation2 + $0xd8] sm:$0x1] %v2289_v18  ;;  %1846 = vmatprep.subr.bf16.mxu1 %v2038_v20  ;;  %v2042_v24 = vld [vmem:[#allocation9 + $0x10] sm:$0xff]   ;;  %v2043_v25 = vld [vmem:[#allocation9 + $0x8] sm:$0xff]  }
  0x74   : > { %1813 = vmatpush3.bf16.msra.mxu0 %v2021_v2  ;;  %738 = vst [vmem:[#allocation2 + $0x59] sm:$0x1] %v2289_v18  ;;  %739 = vst [vmem:[#allocation2 + $0x71] sm:$0x1] %v2289_v18  ;;  %v2044_v26 = vld [vmem:[#allocation9] sm:$0xff]   ;;  %v765_v34 = vld [vmem:[#allocation8] sm:$0xff] }
  0x75   : > { %1814 = vmatprep.subr.bf16.mxu0 %v2022_v3  ;;  %740 = vst [vmem:[#allocation2 + $0x89] sm:$0x1] %v2289_v18  ;;  %741 = vst [vmem:[#allocation2 + $0xa1] sm:$0x1] %v2289_v18  ;;  %v2541_v33 = vld [vmem:[%s3251_s2] ss:$0 sm:$0xff]  ;;  %v2545_v39 = vrot.slane %v765_v34, %v821_v31  ;;  %v2547_v40 = vrot.slane %v765_v34, %v962_v32 }
  0x76   : > { %742 = vst [vmem:[#allocation2 + $0xb9] sm:$0x1] %v2289_v18  ;;  %743 = vst [vmem:[#allocation2 + $0xd1] sm:$0x1] %v2289_v18  ;;  %1847 = vmatpush3.bf16.msra.mxu1 %v2038_v20  ;;  %v668_v35 = vadd.s32 3, %v2535_v28  ;;  %vm676_vm0 = vcmp.ge.s32.totalorder %v666_v30, 1 }
  0x77   : > { %744 = vst [vmem:[#allocation2 + $0xe9] sm:$0x1] %v2289_v18  ;;  %1848 = vmatprep.subr.bf16.mxu1 %v2039_v21  ;;  %v785_v37 = vsub.s32 0, %v784_v29  ;;  %vm686_vm1 = vcmp.lt.s32.totalorder %v666_v30, 17  ;;  %vm675_vm2 = vcmp.ge.s32.totalorder %v2535_v28, 1  ;;  %vm685_vm3 = vcmp.lt.s32.totalorder %v2535_v28, 17 }
  0x78   : > { %1815 = vmatpush3.bf16.msra.mxu0 %v2022_v3  ;;  %v667_v42 = vadd.s32 2, %v2535_v28  ;;  %v910_v43 = vsub.s32 3, %v784_v29  ;;  %vm678_vm4 = vcmp.ge.s32.totalorder %v668_v35, 1  ;;  %vm688_vm5 = vcmp.lt.s32.totalorder %v668_v35, 17  ;;  %vm2554_vm6 = vmand %vm676_vm0, %vm686_vm1  ;;  %s352_s27 = sand.u32 1, %s2243_s25   ;;  %s3313_s9 = sld [smem:[#allocation17_spill]] }
  0x79   : > { %1816 = vmatprep.subr.bf16.mxu0 %v2023_v5  ;;  %v2558_v48 = vrot.slane %v765_v34, %v785_v37  ;;  %v857_v49 = vsub.s32 2, %v784_v29  ;;  %v1014_v50 = vsub.s32 5, %v784_v29  ;;  %v1119_v51 = vsub.s32 7, %v784_v29  ;;  %vm2568_vm7 = vmand %vm675_vm2, %vm685_vm3  ;;  %s1671_s3 = sshll.u32 %s352_s27, 7  ;;  %s1733_s12 = sshll.u32 %s2263_s30, 4 }
  0x7a   : > { %1849 = vmatpush3.bf16.msra.mxu1 %v2039_v21  ;;  %v2562_v55 = vadd.s32 5, %v2535_v28  ;;  %vm677_vm8 = vcmp.ge.s32.totalorder %v667_v42, 1  ;;  %v2573_v58 = vadd.s32 4, %v2535_v28  ;;  %v2575_v59 = vrot.slane %v765_v34, %v910_v43  ;;  %vm2606_vm14 = vmand %vm678_vm4, %vm688_vm5  ;;  %s3139_s5 = scalar_lea.vmem [#allocation11], %s1671_s3  ;;  %s3314_s30 = sld [smem:[#allocation19_spill]] }
  0x7b   : > { %1850 = vmatprep.subr.bf16.mxu1 %v2040_v22  ;;  %v1067_v60 = vsub.s32 6, %v784_v29  ;;  %vm687_vm9 = vcmp.lt.s32.totalorder %v667_v42, 17  ;;  %v2580_v2 = vrot.slane %v765_v34, %v857_v49  ;;  %v2582_v3 = vrot.slane %v765_v34, %v1014_v50  ;;  %s1537_s7 = sshll.u32 %s3139_s5, 4  ;;  %s3315_s14 = sld [smem:[#allocation26_spill]]  ;;  %s3183_s7 = int_to_ptr.vmem [resolvable:$true] %s1537_s7 }
  0x7c   : > { %1817 = vmatpush3.bf16.msra.mxu0 %v2023_v5  ;;  %v2584_v4 = vrot.slane %v765_v34, %v1119_v51  ;;  %vm680_vm10 = vcmp.ge.s32.totalorder %v2562_v55, 1  ;;  %vm690_vm11 = vcmp.lt.s32.totalorder %v2562_v55, 17  ;;  %vm679_vm12 = vcmp.ge.s32.totalorder %v2573_v58, 1  ;;  %vm2627_vm15 = vmand %vm677_vm8, %vm687_vm9  ;;  %s3189_s17 = scalar_lea.sflag [#allocation5], %s352_s27  ;;  %s2151_s18 = scalar_lea.vmem %s3183_s7, 2048 }
  0x7d   : > { %1818 = vmatprep.subr.bf16.mxu0 %v2024_v6  ;;  %vm689_vm13 = vcmp.lt.s32.totalorder %v2573_v58, 17  ;;  %v2611_v19 = vadd.s32 9, %v2535_v28  ;;  %v2614_v20 = vadd.s32 8, %v2535_v28  ;;  %vm2688_vm4 = vmand %vm680_vm10, %vm690_vm11  ;;  %p2152_p1 = scmp.ne.s32.totalorder %s3183_s7, %s2151_s18  ;;  %s2290_s24 = smov [#allocation11]  }
  0x7e   : > { %1851 = vmatpush3.bf16.msra.mxu1 %v2040_v22  ;;  %vm2709_vm5 = vmand %vm679_vm12, %vm689_vm13  ;;  %s1726_s15 = sshll.u32 %s3313_s9, 5  ;;  %s2155_s22 = sshll.u32 %s2290_s24, 4  ;;  %s2156_s22 = int_to_ptr.vmem [resolvable:$false] %s2155_s22 }
  0x7f   : > { %1852 = vmatprep.subr.bf16.mxu1 %v2041_v23  ;;  %vm683_vm8 = vcmp.ge.s32.totalorder %v2614_v20, 1  ;;  %vm693_vm9 = vcmp.lt.s32.totalorder %v2614_v20, 17  ;;  %s1534_s21 = sadd.s32 %s1733_s12, %s1726_s15  ;;  %s2157_s20 = scalar_lea.vmem %s2156_s22, 4096 }
  0x80   : > { %1819 = vmatpush3.bf16.msra.mxu0 %v2024_v6  ;;  %vm2836_vm13 = vmand %vm683_vm8, %vm693_vm9  ;;  %s1727_s23 = sshll.u32 %s1534_s21, 7  ;;  %p3316_p3 = scmp.ne.s32.totalorder %s3314_s30, 0 }
  0x81   : > { %1820 = vmatprep.subr.bf16.mxu0 %v2025_v7  ;;  %s3181_s19 = scalar_lea.hbm %s3315_s14, %s1727_s23  ;;  %p2158_p11 = scmp.lt.s32.totalorder %s3183_s7, %s2156_s22 }
  0x82   : > { %1853 = vmatpush3.bf16.msra.mxu1 %v2041_v23  ;;  %p2153_p7 = pnand %p2152_p1, %p3316_p3  ;;  %p2159_p6 = scmp.lt.s32.totalorder %s2157_s20, %s2151_s18 }
  0x83   : > { %1854 = vmatprep.subr.bf16.mxu1 %v2042_v24 }
  0x84   : > { %1821 = vmatpush3.bf16.msra.mxu0 %v2025_v7  ;;  %p2154_p9 = pneg %p2153_p7  ;;  %p2160_p13 = por %p2159_p6, %p2158_p11 }
  0x85   : > { %1822 = vmatprep.subr.bf16.mxu0 %v2026_v8 }
  0x86   : > { %1855 = vmatpush3.bf16.msra.mxu1 %v2042_v24  ;;  %p2161_p12 = pnand %p2160_p13, %p2154_p9 }
  0x87   : > { %1856 = vmatprep.subr.bf16.mxu1 %v2043_v25 }
  0x88   : > { %1823 = vmatpush3.bf16.msra.mxu0 %v2026_v8 }
  0x8a   : > { %1857 = vmatpush3.bf16.msra.mxu1 %v2043_v25 }
  0x8b   : > { %1825 = vmatmul.mubr.bf16.vlgmr.msra.gmra.mxu0 %v2028_v9  ;;  %1858 = vmatprep.subr.bf16.mxu1 %v2044_v26 }
  0x8c   : > { %1828 = vmatprep.mubr.bf16.mxu0 %v2029_v10  ;;  %v2592_v10 = vadd.s32 7, %v2535_v28 }
  0x8e   : > { %1859 = vmatpush3.bf16.msra.mxu1 %v2044_v26  ;;  %vm682_vm0 = vcmp.ge.s32.totalorder %v2592_v10, 1  ;;  %vm692_vm1 = vcmp.lt.s32.totalorder %v2592_v10, 17 }
  0x8f   : > { %vm2750_vm10 = vmand %vm682_vm0, %vm692_vm1 }
  0x93   : > { %1829 = vmatmul.mubr.bf16.gmra.mxu0 %v2030_v11  ;;  %v2595_v11 = vadd.s32 6, %v2535_v28 }
  0x94   : > { %1832 = vmatprep.mubr.bf16.mxu0 %v2031_v12  ;;  %v2597_v12 = vrot.slane %v765_v34, %v1067_v60 }
  0x95   : > { %vm681_vm2 = vcmp.ge.s32.totalorder %v2595_v11, 1  ;;  %vm691_vm3 = vcmp.lt.s32.totalorder %v2595_v11, 17 }
  0x96   : > { %vm2774_vm11 = vmand %vm681_vm2, %vm691_vm3 }
  0x9b   : > { %1833 = vmatmul.mubr.bf16.gmra.mxu0 %v2032_v13 }
  0x9c   : > { %1836 = vmatprep.mubr.bf16.mxu0 %v2033_v14 }
  0xa3   : > { %1837 = vmatmul.mubr.bf16.gmra.mxu0 %v2034_v15 }
  0xa4   : > { %1840 = vmatprep.mubr.bf16.mxu0 %v2035_v16 }
  0xab   : > { %1841 = vmatmul.mubr.bf16.gmra.mxu0 %v2036_v17 }
 0x14b   : > { %v1826_v36 = vpop.f32.mrf.mxu0 }
 0x14c   : > { %v555_v38 = vadd.f32 %v1826_v36, %v2541_v33 }
 0x14d   : > { %v546_v41 = vpop.f32.mrf.mxu0 }
 0x14e   : > { %v627_v44 = vmax.f32 %v555_v38, 0.0  ;;  %v547_v45 = vadd.f32 %v2541_v33, %v546_v41 }
 0x14f   : > { %v1827_v47 = vpop.f32.mrf.mxu0 }
 0x150   : > { %v647_v52 = vmin.f32 %v627_v44, 6.0  ;;  %v625_v53 = vmax.f32 %v547_v45, 0.0  ;;  %v558_v54 = vadd.f32 %v1827_v47, %v2541_v33 }
 0x151   : > { %v549_v57 = vpop.f32.mrf.mxu0 }
 0x152   : > { %v707_v61 = vsel %vm2554_vm6, %v647_v52, 0.0  ;;  %v645_v62 = vmin.f32 %v625_v53, 6.0  ;;  %v628_v63 = vmax.f32 %v558_v54, 0.0  ;;  %v550_v0 = vadd.f32 %v2541_v33, %v549_v57 }
 0x153   : > { %747 = vst [vmem:[#allocation2 + $0x19] sm:$0xff] %v707_v61  ;;  %v1830_v1 = vpop.f32.mrf.mxu0  ;;  %v2617_v21 = vmul.f32 %v2547_v40, %v707_v61  ;;  %v2620_v22 = vmul.f32 %v2545_v39, %v707_v61 }
 0x154   : > { %v705_v5 = vsel %vm2568_vm7, %v645_v62, 0.0  ;;  %v648_v6 = vmin.f32 %v628_v63, 6.0  ;;  %v626_v7 = vmax.f32 %v550_v0, 0.0  ;;  %v571_v8 = vadd.f32 %v1830_v1, %v2541_v33 }
 0x155   : > { %745 = vst [vmem:[#allocation2 + $0x1] sm:$0xff] %v705_v5  ;;  %v562_v9 = vpop.f32.mrf.mxu0  ;;  %v823_v29 = vmul.f32 %v2545_v39, %v705_v5 }
 0x156   : > { %v708_v13 = vsel %vm2554_vm6, %v648_v6, 0.0  ;;  %v646_v14 = vmin.f32 %v626_v7, 6.0  ;;  %v631_v15 = vmax.f32 %v571_v8, 0.0  ;;  %v563_v16 = vadd.f32 %v2541_v33, %v562_v9  ;;  %v2754_v6 = vld [vmem:[#allocation8 + $0x8] ss:$0 sm:$0xff] }
 0x157   : > { %748 = vst [vmem:[#allocation2 + $0x21] sm:$0xff] %v708_v13  ;;  %v1831_v18 = vpop.f32.mrf.mxu0  ;;  %v2634_v31 = vmul.f32 %v2547_v40, %v708_v13  ;;  %v2637_v32 = vmul.f32 %v2545_v39, %v708_v13  ;;  %vm684_vm6 = vcmp.ge.s32.totalorder %v2611_v19, 1 }
 0x158   : > { %v706_v23 = vsel %vm2568_vm7, %v646_v14, 0.0  ;;  %v651_v24 = vmin.f32 %v631_v15, 6.0  ;;  %v629_v25 = vmax.f32 %v563_v16, 0.0  ;;  %v574_v26 = vadd.f32 %v1831_v18, %v2541_v33 }
 0x159   : > { %746 = vst [vmem:[#allocation2 + $0x9] sm:$0xff] %v706_v23  ;;  %v565_v28 = vpop.f32.mrf.mxu0  ;;  %v824_v30 = vmul.f32 %v2545_v39, %v706_v23  ;;  %vm694_vm7 = vcmp.lt.s32.totalorder %v2611_v19, 17 }
 0x15a   : > { %v2641_v34 = vsel %vm2606_vm14, %v651_v24, 0.0  ;;  %v649_v35 = vmin.f32 %v629_v25, 6.0  ;;  %v632_v36 = vmax.f32 %v574_v26, 0.0  ;;  %v566_v37 = vadd.f32 %v2541_v33, %v565_v28  ;;  %v892_v38 = vld [vmem:[#allocation2 + $0x18] sm:$0xff]  ;;  %vm2819_vm12 = vmand %vm684_vm6, %vm694_vm7 }
 0x15b   : > { %751 = vst [vmem:[#allocation2 + $0x49] sm:$0xff] %v2641_v34  ;;  %v1834_v41 = vpop.f32.mrf.mxu0  ;;  %v912_v42 = vmul.f32 %v2575_v59, %v892_v38  ;;  %v2647_v43 = vmul.f32 %v892_v38, %v2558_v48  ;;  %v2651_v44 = vmul.f32 %v2584_v4, %v2641_v34  ;;  %v2655_v45 = vmul.f32 %v2547_v40, %v2641_v34 }
 0x15c   : > { %v2659_v46 = vsel %vm2627_vm15, %v649_v35, 0.0  ;;  %v652_v47 = vmin.f32 %v632_v36, 6.0  ;;  %v630_v49 = vmax.f32 %v566_v37, 0.0  ;;  %v587_v50 = vadd.f32 %v1834_v41, %v2541_v33  ;;  %v767_v51 = vld [vmem:[#allocation2] sm:$0xff] }
 0x15d   : > { %749 = vst [vmem:[#allocation2 + $0x31] sm:$0xff] %v2659_v46  ;;  %v578_v52 = vpop.f32.mrf.mxu0  ;;  %v787_v53 = vmul.f32 %v2558_v48, %v767_v51  ;;  %v928_v54 = vadd.f32 %v912_v42, %v823_v29  ;;  %v2668_v56 = vmul.f32 %v2584_v4, %v2659_v46  ;;  %v2672_v57 = vmul.f32 %v2547_v40, %v2659_v46 }
 0x15e   : > { %v2676_v60 = vsel %vm2606_vm14, %v652_v47, 0.0  ;;  %v650_v61 = vmin.f32 %v630_v49, 6.0  ;;  %v635_v62 = vmax.f32 %v587_v50, 0.0  ;;  %v579_v63 = vadd.f32 %v2541_v33, %v578_v52  ;;  %v893_v0 = vld [vmem:[#allocation2 + $0x20] sm:$0xff] }
 0x15f   : > { %v996_v1 = vld [vmem:[#allocation2 + $0x1a] sm:$0xff]  ;;  %v2681_v5 = vld [vmem:[#allocation2 + $0x22] sm:$0xff]  ;;  %752 = vst [vmem:[#allocation2 + $0x51] sm:$0xff] %v2676_v60  ;;  %v1835_v7 = vpop.f32.mrf.mxu0  ;;  %v913_v8 = vmul.f32 %v2575_v59, %v893_v0  ;;  %v2697_v14 = vmul.f32 %v893_v0, %v2558_v48 }
 0x160   : > { %v1016_v9 = vmul.f32 %v2582_v3, %v996_v1  ;;  %v1017_v13 = vmul.f32 %v2582_v3, %v2681_v5  ;;  %v2701_v15 = vsel %vm2627_vm15, %v650_v61, 0.0  ;;  %v655_v55 = vmin.f32 %v635_v62, 6.0  ;;  %v768_v18 = vld [vmem:[#allocation2 + $0x8] sm:$0xff] }
 0x161   : > { %v633_v16 = vmax.f32 %v579_v63, 0.0  ;;  %v590_v17 = vadd.f32 %v1835_v7, %v2541_v33  ;;  %v839_v23 = vld [vmem:[#allocation2 + $0x2] sm:$0xff]  ;;  %v840_v24 = vld [vmem:[#allocation2 + $0xa] sm:$0xff]  ;;  %750 = vst [vmem:[#allocation2 + $0x39] sm:$0xff] %v2701_v15  ;;  %v581_v26 = vpop.f32.mrf.mxu0  ;;  %v788_v27 = vmul.f32 %v2558_v48, %v768_v18  ;;  %v929_v35 = vadd.f32 %v913_v8, %v824_v30 }
 0x162   : > { %v859_v28 = vmul.f32 %v2580_v2, %v839_v23  ;;  %v860_v29 = vmul.f32 %v2580_v2, %v840_v24  ;;  %v2718_v36 = vsel %vm2688_vm4, %v655_v55, 0.0  ;;  %v582_v58 = vadd.f32 %v2541_v33, %v581_v26 }
 0x163   : > { %v653_v37 = vmin.f32 %v633_v16, 6.0  ;;  %v636_v38 = vmax.f32 %v590_v17, 0.0  ;;  %755 = vst [vmem:[#allocation2 + $0x79] sm:$0xff] %v2718_v36  ;;  %v1838_v41 = vpop.f32.mrf.mxu0  ;;  %v1032_v49 = vadd.f32 %v1016_v9, %v928_v54  ;;  %v1033_v50 = vadd.f32 %v1017_v13, %v929_v35 }
 0x164   : > { %v875_v42 = vadd.f32 %v859_v28, %v787_v53  ;;  %v876_v47 = vadd.f32 %v860_v29, %v788_v27  ;;  %v634_v52 = vmax.f32 %v582_v58, 0.0  ;;  %v603_v61 = vadd.f32 %v1838_v41, %v2541_v33  ;;  %v2729_v62 = vld [vmem:[#allocation2 + $0x30] sm:$0xff] }
 0x165   : > { %v2724_v51 = vsel %vm2709_vm5, %v653_v37, 0.0  ;;  %v656_v30 = vmin.f32 %v636_v38, 6.0  ;;  %v594_v53 = vpop.f32.mrf.mxu0  ;;  %v1069_v0 = vmul.f32 %v2597_v12, %v2729_v62  ;;  %v1122_v7 = vmul.f32 %v2584_v4, %v2701_v15 }
 0x166   : > { %753 = vst [vmem:[#allocation2 + $0x61] sm:$0xff] %v2724_v51  ;;  %v980_v54 = vadd.f32 %v2617_v21, %v875_v42  ;;  %v981_v63 = vadd.f32 %v2634_v31, %v876_v47  ;;  %v654_v9 = vmin.f32 %v634_v52, 6.0  ;;  %v639_v13 = vmax.f32 %v603_v61, 0.0 }
 0x167   : > { %v2740_v8 = vsel %vm2688_vm4, %v656_v30, 0.0  ;;  %v595_v55 = vadd.f32 %v2541_v33, %v594_v53  ;;  %v1839_v31 = vpop.f32.mrf.mxu0  ;;  %v1137_v17 = vadd.f32 %v2668_v56, %v1032_v49  ;;  %v1138_v18 = vadd.f32 %v1122_v7, %v1033_v50  ;;  %v2802_v7 = vld [vmem:[%s3253_s4] ss:$0 sm:$0xff] }
 0x168   : > { %756 = vst [vmem:[#allocation2 + $0x81] sm:$0xff] %v2740_v8  ;;  %v1085_v16 = vadd.f32 %v1069_v0, %v980_v54  ;;  %v861_v23 = vmul.f32 %v996_v1, %v2580_v2  ;;  %v2760_v24 = vsel %vm2709_vm5, %v654_v9, 0.0  ;;  %v659_v26 = vmin.f32 %v639_v13, 6.0  ;;  %v2763_v28 = vld [vmem:[#allocation2 + $0x38] sm:$0xff] }
 0x169   : > { %v637_v27 = vmax.f32 %v595_v55, 0.0  ;;  %v606_v10 = vadd.f32 %v1839_v31, %v2541_v33  ;;  %v2765_v29 = vld [vmem:[#allocation2 + $0x32] sm:$0xff]  ;;  %v2767_v35 = vld [vmem:[#allocation2 + $0x3a] sm:$0xff]  ;;  %754 = vst [vmem:[#allocation2 + $0x69] sm:$0xff] %v2760_v24  ;;  %v597_v1 = vpop.f32.mrf.mxu0  ;;  %v1070_v25 = vmul.f32 %v2597_v12, %v2763_v28  ;;  %v862_v58 = vmul.f32 %v2681_v5, %v2580_v2 }
 0x16a   : > { %v1173_v37 = vmul.f32 %v2754_v6, %v2765_v29  ;;  %v1174_v38 = vmul.f32 %v2754_v6, %v2767_v35  ;;  %v2788_v11 = vsel %vm2750_vm10, %v659_v26, 0.0  ;;  %v598_v47 = vadd.f32 %v2541_v33, %v597_v1 }
 0x16b   : > { %v657_v41 = vmin.f32 %v637_v27, 6.0  ;;  %v640_v42 = vmax.f32 %v606_v10, 0.0  ;;  %759 = vst [vmem:[#allocation2 + $0xa9] sm:$0xff] %v2788_v11  ;;  %v1842_v49 = vpop.f32.mrf.mxu0  ;;  %v1086_v50 = vadd.f32 %v1070_v25, %v981_v63  ;;  %v877_v52 = vadd.f32 %v861_v23, %v2647_v43 }
 0x16c   : > { %v1189_v30 = vadd.f32 %v1173_v37, %v1085_v16  ;;  %v878_v61 = vadd.f32 %v862_v58, %v2697_v14  ;;  %v638_v54 = vmax.f32 %v598_v47, 0.0  ;;  %v619_v0 = vadd.f32 %v1842_v49, %v2541_v33 }
 0x16d   : > { %v2796_v5 = vsel %vm2774_vm11, %v657_v41, 0.0  ;;  %v660_v53 = vmin.f32 %v640_v42, 6.0  ;;  %v610_v63 = vpop.f32.mrf.mxu0  ;;  %v1190_v9 = vadd.f32 %v1174_v38, %v1086_v50  ;;  %v914_v14 = vmul.f32 %v2729_v62, %v2575_v59  ;;  %v2847_v50 = vld [vmem:[#allocation2 + $0x48] sm:$0xff] }
 0x16e   : > { %757 = vst [vmem:[#allocation2 + $0x91] sm:$0xff] %v2796_v5  ;;  %v1205_v43 = vadd.f32 %v1189_v30, %v1137_v17  ;;  %v915_v13 = vmul.f32 %v2763_v28, %v2575_v59  ;;  %v658_v31 = vmin.f32 %v638_v54, 6.0  ;;  %v643_v16 = vmax.f32 %v619_v0, 0.0  ;;  %v2849_v30 = vld [vmem:[#allocation2 + $0x50] sm:$0xff] }
 0x16f   : > { %v2811_v55 = vsel %vm2750_vm10, %v660_v53, 0.0  ;;  %v611_v23 = vadd.f32 %v2541_v33, %v610_v63  ;;  %v1843_v26 = vpop.f32.mrf.mxu0  ;;  %v1206_v27 = vadd.f32 %v1190_v9, %v1138_v18  ;;  %v930_v10 = vadd.f32 %v914_v14, %v2620_v22 }
 0x170   : > { %760 = vst [vmem:[#allocation2 + $0xb1] sm:$0xff] %v2811_v55  ;;  %v1228_v21 = vadd.f32 %v2802_v7, %v1205_v43  ;;  %v931_v1 = vadd.f32 %v915_v13, %v2637_v32  ;;  %v2828_v25 = vsel %vm2774_vm11, %v658_v31, 0.0  ;;  %v663_v37 = vmin.f32 %v643_v16, 6.0  ;;  %v2864_v31 = vld [vmem:[#allocation2 + $0x4a] sm:$0xff]  ;;  %v2866_v16 = vld [vmem:[#allocation2 + $0x52] sm:$0xff] }
 0x171   : > { %v641_v38 = vmax.f32 %v611_v23, 0.0  ;;  %v622_v19 = vadd.f32 %v1843_v26, %v2541_v33  ;;  %758 = vst [vmem:[#allocation2 + $0x99] sm:$0xff] %v2828_v25  ;;  %v613_v22 = vpop.f32.mrf.mxu0  ;;  %v1229_v32 = vadd.f32 %v2802_v7, %v1206_v27  ;;  %v967_v58 = vmul.f32 %v2547_v40, %v2701_v15 }
 0x172   : > { %v1244_v56 = vmax.f32 %v1228_v21, 0.0  ;;  %v982_v41 = vadd.f32 %v2672_v57, %v877_v52  ;;  %v723_v42 = vsel %vm2819_vm12, %v663_v37, 0.0  ;;  %v614_v20 = vadd.f32 %v2541_v33, %v613_v22 }
 0x173   : > { %v661_v47 = vmin.f32 %v641_v38, 6.0  ;;  %v644_v49 = vmax.f32 %v622_v19, 0.0  ;;  %763 = vst [vmem:[#allocation2 + $0xd9] sm:$0xff] %v723_v42  ;;  %v1245_v53 = vmax.f32 %v1229_v32, 0.0  ;;  %v983_v0 = vadd.f32 %v967_v58, %v878_v61 }
 0x174   : > { %v1260_v54 = vmin.f32 %v1244_v56, 6.0  ;;  %v1018_v63 = vmul.f32 %v2765_v29, %v2582_v3  ;;  %v642_v9 = vmax.f32 %v614_v20, 0.0  ;;  %v1019_v33 = vmul.f32 %v2767_v35, %v2582_v3  ;;  %v2894_v20 = vld [vmem:[#allocation2 + $0x60] sm:$0xff] }
 0x175   : > { %v2855_v57 = vsel %vm2836_vm13, %v661_v47, 0.0  ;;  %v664_v52 = vmin.f32 %v644_v49, 6.0  ;;  %v1261_v43 = vmin.f32 %v1245_v53, 6.0  ;;  %v1071_v13 = vmul.f32 %v2597_v12, %v2847_v50 }
 0x176   : > { %761 = vst [vmem:[#allocation2 + $0xc1] sm:$0xff] %v2855_v57  ;;  %v1034_v14 = vadd.f32 %v1018_v63, %v930_v10  ;;  %v1072_v61 = vmul.f32 %v2597_v12, %v2849_v30  ;;  %v662_v26 = vmin.f32 %v642_v9, 6.0  ;;  %v1035_v27 = vadd.f32 %v1019_v33, %v931_v1  ;;  %v2904_v63 = vld [vmem:[#allocation2 + $0x68] sm:$0xff] }
 0x177   : > { %v724_v23 = vsel %vm2819_vm12, %v664_v52, 0.0  ;;  %v1124_v21 = vmul.f32 %v2584_v4, %v2676_v60  ;;  %v1276_v10 = vpack.c.bf16 %v1261_v43, %v1260_v54  ;;  %v1087_v37 = vadd.f32 %v1071_v13, %v982_v41 }
 0x178   : > { %764 = vst [vmem:[#allocation2 + $0xe1] sm:$0xff] %v724_v23  ;;  %v1088_v38 = vadd.f32 %v1072_v61, %v983_v0  ;;  %v1139_v19 = vadd.f32 %v2651_v44, %v1034_v14  ;;  %v2875_v22 = vsel %vm2836_vm13, %v662_v26, 0.0  ;;  %v1175_v17 = vmul.f32 %v2754_v6, %v2864_v31  ;;  %v2913_v23 = vld [vmem:[#allocation2 + $0x62] sm:$0xff]  ;;  %v2915_v26 = vld [vmem:[#allocation2 + $0x6a] sm:$0xff] }
 0x179   : > { %v1140_v32 = vadd.f32 %v1124_v21, %v1035_v27  ;;  %v1176_v1 = vmul.f32 %v2754_v6, %v2866_v16  ;;  %762 = vst [vmem:[#allocation2 + $0xc9] sm:$0xff] %v2875_v22  ;;  %1860 = vmatprep.mubr.bf16.mxu1 %v1276_v10  ;;  %v791_v56 = vmul.f32 %v2729_v62, %v2558_v48 }
 0x17a   : > { %v792_v44 = vmul.f32 %v2763_v28, %v2558_v48  ;;  %v827_v18 = vmul.f32 %v2545_v39, %v2659_v46  ;;  %v828_v58 = vmul.f32 %v2545_v39, %v2701_v15  ;;  %v1191_v41 = vadd.f32 %v1175_v17, %v1087_v37 }
 0x17b   : > { %v1192_v42 = vadd.f32 %v1176_v1, %v1088_v38  ;;  %v863_v47 = vmul.f32 %v2765_v29, %v2580_v2  ;;  %v864_v49 = vmul.f32 %v2767_v35, %v2580_v2  ;;  %v916_v62 = vmul.f32 %v2847_v50, %v2575_v59 }
 0x17c   : > { %v917_v28 = vmul.f32 %v2849_v30, %v2575_v59  ;;  %v969_v46 = vmul.f32 %v2547_v40, %v2676_v60  ;;  %v1020_v15 = vmul.f32 %v2864_v31, %v2582_v3  ;;  %v1207_v53 = vadd.f32 %v1191_v41, %v1139_v19 }
 0x17d   : > { %v1208_v54 = vadd.f32 %v1192_v42, %v1140_v32  ;;  %v879_v29 = vadd.f32 %v863_v47, %v791_v56  ;;  %v880_v0 = vadd.f32 %v864_v49, %v792_v44  ;;  %v932_v35 = vadd.f32 %v916_v62, %v827_v18 }
 0x17e   : > { %v933_v52 = vadd.f32 %v917_v28, %v828_v58  ;;  %v1021_v9 = vmul.f32 %v2866_v16, %v2582_v3  ;;  %v1073_v33 = vmul.f32 %v2597_v12, %v2894_v20  ;;  %v1230_v43 = vadd.f32 %v2802_v7, %v1207_v53 }
 0x17f   : > { %v1231_v14 = vadd.f32 %v2802_v7, %v1208_v54  ;;  %v984_v13 = vadd.f32 %v2655_v45, %v879_v29  ;;  %v985_v61 = vadd.f32 %v969_v46, %v880_v0  ;;  %v1036_v27 = vadd.f32 %v1020_v15, %v932_v35 }
 0x180   : > { %v1037_v21 = vadd.f32 %v1021_v9, %v933_v52  ;;  %v1074_v10 = vmul.f32 %v2597_v12, %v2904_v63  ;;  %v1125_v37 = vmul.f32 %v2584_v4, %v2724_v51  ;;  %v1246_v38 = vmax.f32 %v1230_v43, 0.0  ;;  %v2947_v52 = vld [vmem:[#allocation2 + $0x78] sm:$0xff] }
 0x181   : > { %v1247_v19 = vmax.f32 %v1231_v14, 0.0  ;;  %v1089_v32 = vadd.f32 %v1073_v33, %v984_v13  ;;  %v1126_v17 = vmul.f32 %v2584_v4, %v2760_v24  ;;  %v1177_v56 = vmul.f32 %v2754_v6, %v2913_v23 }
 0x182   : > { %v1090_v45 = vadd.f32 %v1074_v10, %v985_v61  ;;  %v1141_v1 = vadd.f32 %v1125_v37, %v1036_v27  ;;  %v1178_v44 = vmul.f32 %v2754_v6, %v2915_v26  ;;  %v1262_v18 = vmin.f32 %v1246_v38, 6.0 }
 0x183   : > { %v1263_v58 = vmin.f32 %v1247_v19, 6.0  ;;  %v1142_v41 = vadd.f32 %v1126_v17, %v1037_v21  ;;  %v793_v42 = vmul.f32 %v2847_v50, %v2558_v48  ;;  %v1193_v47 = vadd.f32 %v1177_v56, %v1089_v32  ;;  %v2961_v32 = vld [vmem:[#allocation2 + $0x7a] sm:$0xff]  ;;  %v2963_v17 = vld [vmem:[#allocation2 + $0x82] sm:$0xff] }
 0x184   : > { %v1194_v49 = vadd.f32 %v1178_v44, %v1090_v45  ;;  %v794_v62 = vmul.f32 %v2849_v30, %v2558_v48  ;;  %v829_v28 = vmul.f32 %v2545_v39, %v2641_v34  ;;  %v830_v15 = vmul.f32 %v2545_v39, %v2676_v60 }
 0x185   : > { %v1277_v46 = vpack.c.bf16 %v1263_v58, %v1262_v18  ;;  %v865_v53 = vmul.f32 %v2864_v31, %v2580_v2  ;;  %v866_v54 = vmul.f32 %v2866_v16, %v2580_v2  ;;  %v1209_v29 = vadd.f32 %v1193_v47, %v1141_v1  ;;  %v2949_v16 = vld [vmem:[#allocation2 + $0x80] sm:$0xff] }
 0x186   : > { %v1210_v50 = vadd.f32 %v1194_v49, %v1142_v41  ;;  %v918_v0 = vmul.f32 %v2894_v20, %v2575_v59  ;;  %v919_v30 = vmul.f32 %v2904_v63, %v2575_v59  ;;  %v970_v60 = vmul.f32 %v2547_v40, %v2724_v51 }
 0x187   : > { %1861 = vmatmul.mubr.bf16.vlgmr.msra.gmra.mxu1 %v1277_v46  ;;  %v881_v34 = vadd.f32 %v865_v53, %v793_v42  ;;  %v882_v35 = vadd.f32 %v866_v54, %v794_v62  ;;  %v971_v31 = vmul.f32 %v2547_v40, %v2760_v24  ;;  %v1232_v9 = vadd.f32 %v2802_v7, %v1209_v29 }
 0x188   : > { %v1233_v33 = vadd.f32 %v2802_v7, %v1210_v50  ;;  %v934_v43 = vadd.f32 %v918_v0, %v829_v28  ;;  %v935_v14 = vadd.f32 %v919_v30, %v830_v15  ;;  %v1022_v27 = vmul.f32 %v2913_v23, %v2582_v3 }
 0x189   : > { %v986_v13 = vadd.f32 %v970_v60, %v881_v34  ;;  %v987_v61 = vadd.f32 %v971_v31, %v882_v35  ;;  %v1023_v21 = vmul.f32 %v2915_v26, %v2582_v3  ;;  %v1248_v10 = vmax.f32 %v1232_v9, 0.0  ;;  %v2995_v9 = vld [vmem:[#allocation2 + $0x98] sm:$0xff] }
 0x18a   : > { %v1249_v37 = vmax.f32 %v1233_v33, 0.0  ;;  %v1075_v38 = vmul.f32 %v2597_v12, %v2947_v52  ;;  %v1076_v19 = vmul.f32 %v2597_v12, %v2949_v16  ;;  %v1038_v45 = vadd.f32 %v1022_v27, %v934_v43 }
 0x18b   : > { %v1039_v1 = vadd.f32 %v1023_v21, %v935_v14  ;;  %v1127_v56 = vmul.f32 %v2584_v4, %v2718_v36  ;;  %v1128_v44 = vmul.f32 %v2584_v4, %v2740_v8  ;;  %v1264_v18 = vmin.f32 %v1248_v10, 6.0  ;;  %v3003_v10 = vld [vmem:[#allocation2 + $0x92] sm:$0xff] }
 0x18c   : > { %v1265_v58 = vmin.f32 %v1249_v37, 6.0  ;;  %v1091_v41 = vadd.f32 %v1075_v38, %v986_v13  ;;  %v1092_v42 = vadd.f32 %v1076_v19, %v987_v61  ;;  %v1179_v62 = vmul.f32 %v2754_v6, %v2961_v32 }
 0x18d   : > { %v1143_v47 = vadd.f32 %v1127_v56, %v1038_v45  ;;  %v1144_v49 = vadd.f32 %v1128_v44, %v1039_v1  ;;  %v1180_v28 = vmul.f32 %v2754_v6, %v2963_v17  ;;  %v795_v15 = vmul.f32 %v2894_v20, %v2558_v48  ;;  %v3009_v1 = vld [vmem:[#allocation2 + $0x9a] sm:$0xff] }
 0x18e   : > { %v1278_v46 = vpack.c.bf16 %v1265_v58, %v1264_v18  ;;  %v796_v53 = vmul.f32 %v2904_v63, %v2558_v48  ;;  %v831_v54 = vmul.f32 %v2545_v39, %v2724_v51  ;;  %v1195_v29 = vadd.f32 %v1179_v62, %v1091_v41 }
 0x18f   : > { %v1196_v50 = vadd.f32 %v1180_v28, %v1092_v42  ;;  %v832_v0 = vmul.f32 %v2545_v39, %v2760_v24  ;;  %v867_v30 = vmul.f32 %v2913_v23, %v2580_v2  ;;  %v868_v34 = vmul.f32 %v2915_v26, %v2580_v2  ;;  %v2993_v23 = vld [vmem:[#allocation2 + $0x90] sm:$0xff] }
 0x190   : > { %1864 = vmatprep.mubr.bf16.mxu1 %v1278_v46  ;;  %v920_v20 = vmul.f32 %v2947_v52, %v2575_v59  ;;  %v921_v63 = vmul.f32 %v2949_v16, %v2575_v59  ;;  %v972_v51 = vmul.f32 %v2547_v40, %v2718_v36  ;;  %v1211_v35 = vadd.f32 %v1195_v29, %v1143_v47 }
 0x191   : > { %v1212_v60 = vadd.f32 %v1196_v50, %v1144_v49  ;;  %v883_v31 = vadd.f32 %v867_v30, %v795_v15  ;;  %v973_v24 = vmul.f32 %v2547_v40, %v2740_v8  ;;  %v884_v26 = vadd.f32 %v868_v34, %v796_v53 }
 0x192   : > { %v936_v33 = vadd.f32 %v920_v20, %v831_v54  ;;  %v937_v43 = vadd.f32 %v921_v63, %v832_v0  ;;  %v1024_v14 = vmul.f32 %v2961_v32, %v2582_v3  ;;  %v1234_v13 = vadd.f32 %v2802_v7, %v1211_v35 }
 0x193   : > { %v1235_v61 = vadd.f32 %v2802_v7, %v1212_v60  ;;  %v988_v27 = vadd.f32 %v972_v51, %v883_v31  ;;  %v1025_v21 = vmul.f32 %v2963_v17, %v2582_v3  ;;  %v989_v37 = vadd.f32 %v973_v24, %v884_v26  ;;  %v3039_v31 = vld [vmem:[#allocation2 + $0xa8] sm:$0xff] }
 0x194   : > { %v1040_v38 = vadd.f32 %v1024_v14, %v936_v33  ;;  %v1077_v19 = vmul.f32 %v2597_v12, %v2993_v23  ;;  %v1078_v45 = vmul.f32 %v2597_v12, %v2995_v9  ;;  %v1250_v56 = vmax.f32 %v1234_v13, 0.0  ;;  %v3042_v33 = vld [vmem:[#allocation2 + $0xb0] sm:$0xff] }
 0x195   : > { %v1251_v44 = vmax.f32 %v1235_v61, 0.0  ;;  %v1041_v18 = vadd.f32 %v1025_v21, %v937_v43  ;;  %v1129_v58 = vmul.f32 %v2584_v4, %v2796_v5  ;;  %v1130_v47 = vmul.f32 %v2584_v4, %v2828_v25 }
 0x196   : > { %v1093_v41 = vadd.f32 %v1077_v19, %v988_v27  ;;  %v1094_v42 = vadd.f32 %v1078_v45, %v989_v37  ;;  %v1181_v49 = vmul.f32 %v2754_v6, %v3003_v10  ;;  %v1266_v62 = vmin.f32 %v1250_v56, 6.0  ;;  %v3051_v19 = vld [vmem:[#allocation2 + $0xaa] sm:$0xff]  ;;  %v3053_v45 = vld [vmem:[#allocation2 + $0xb2] sm:$0xff] }
 0x197   : > { %v1267_v28 = vmin.f32 %v1251_v44, 6.0  ;;  %v1145_v46 = vadd.f32 %v1129_v58, %v1040_v38  ;;  %v1182_v15 = vmul.f32 %v2754_v6, %v3009_v1  ;;  %v1146_v53 = vadd.f32 %v1130_v47, %v1041_v18 }
 0x198   : > { %v1197_v54 = vadd.f32 %v1181_v49, %v1093_v41  ;;  %v797_v29 = vmul.f32 %v2947_v52, %v2558_v48  ;;  %v798_v50 = vmul.f32 %v2949_v16, %v2558_v48  ;;  %v833_v34 = vmul.f32 %v2545_v39, %v2718_v36 }
 0x199   : > { %v1279_v0 = vpack.c.bf16 %v1267_v28, %v1266_v62  ;;  %v1198_v30 = vadd.f32 %v1182_v15, %v1094_v42  ;;  %v834_v20 = vmul.f32 %v2545_v39, %v2740_v8  ;;  %v869_v51 = vmul.f32 %v2961_v32, %v2580_v2 }
 0x19a   : > { %v1213_v63 = vadd.f32 %v1197_v54, %v1145_v46  ;;  %v870_v35 = vmul.f32 %v2963_v17, %v2580_v2  ;;  %v922_v52 = vmul.f32 %v2993_v23, %v2575_v59  ;;  %v923_v60 = vmul.f32 %v2995_v9, %v2575_v59 }
 0x19b   : > { %1865 = vmatmul.mubr.bf16.gmra.mxu1 %v1279_v0  ;;  %v1214_v16 = vadd.f32 %v1198_v30, %v1146_v53  ;;  %v974_v36 = vmul.f32 %v2547_v40, %v2796_v5  ;;  %v975_v8 = vmul.f32 %v2547_v40, %v2828_v25  ;;  %v885_v24 = vadd.f32 %v869_v51, %v797_v29 }
 0x19c   : > { %v1236_v32 = vadd.f32 %v2802_v7, %v1213_v63  ;;  %v886_v17 = vadd.f32 %v870_v35, %v798_v50  ;;  %v938_v26 = vadd.f32 %v922_v52, %v833_v34  ;;  %v939_v14 = vadd.f32 %v923_v60, %v834_v20  ;;  %v1061_v60 = vld [vmem:[#allocation2 + $0xc0] sm:$0xff] }
 0x19d   : > { %v1237_v43 = vadd.f32 %v2802_v7, %v1214_v16  ;;  %v1026_v13 = vmul.f32 %v3003_v10, %v2582_v3  ;;  %v1027_v61 = vmul.f32 %v3009_v1, %v2582_v3  ;;  %v990_v21 = vadd.f32 %v974_v36, %v885_v24 }
 0x19e   : > { %v1252_v27 = vmax.f32 %v1236_v32, 0.0  ;;  %v991_v37 = vadd.f32 %v975_v8, %v886_v17  ;;  %v1079_v38 = vmul.f32 %v2597_v12, %v3039_v31  ;;  %v1080_v58 = vmul.f32 %v2597_v12, %v3042_v33 }
 0x19f   : > { %v1253_v56 = vmax.f32 %v1237_v43, 0.0  ;;  %v1042_v44 = vadd.f32 %v1026_v13, %v938_v26  ;;  %v1043_v18 = vadd.f32 %v1027_v61, %v939_v14  ;;  %v1131_v47 = vmul.f32 %v2584_v4, %v2788_v11  ;;  %v1165_v61 = vld [vmem:[#allocation2 + $0xc2] sm:$0xff] }
 0x1a0   : > { %v1268_v41 = vmin.f32 %v1252_v27, 6.0  ;;  %v1095_v42 = vadd.f32 %v1079_v38, %v990_v21  ;;  %v1132_v49 = vmul.f32 %v2584_v4, %v2811_v55  ;;  %v1096_v28 = vadd.f32 %v1080_v58, %v991_v37  ;;  %v1166_v38 = vld [vmem:[#allocation2 + $0xca] sm:$0xff] }
 0x1a1   : > { %v1269_v62 = vmin.f32 %v1253_v56, 6.0  ;;  %v1183_v46 = vmul.f32 %v2754_v6, %v3051_v19  ;;  %v1184_v15 = vmul.f32 %v2754_v6, %v3053_v45  ;;  %v1147_v53 = vadd.f32 %v1131_v47, %v1042_v44 }
 0x1a2   : > { %v1148_v54 = vadd.f32 %v1132_v49, %v1043_v18  ;;  %v799_v29 = vmul.f32 %v2993_v23, %v2558_v48  ;;  %v800_v50 = vmul.f32 %v2995_v9, %v2558_v48  ;;  %v835_v20 = vmul.f32 %v2545_v39, %v2796_v5 }
 0x1a3   : > { %v1280_v0 = vpack.c.bf16 %v1269_v62, %v1268_v41  ;;  %v1199_v30 = vadd.f32 %v1183_v46, %v1095_v42  ;;  %v1200_v34 = vadd.f32 %v1184_v15, %v1096_v28  ;;  %v836_v63 = vmul.f32 %v2545_v39, %v2828_v25  ;;  %v817_v41 = vld [vmem:[#allocation2 + $0xa9] sm:$0xff]  ;;  %v818_v28 = vld [vmem:[#allocation2 + $0xb1] sm:$0xff] }
 0x1a4   : > { %v871_v51 = vmul.f32 %v3003_v10, %v2580_v2  ;;  %v872_v35 = vmul.f32 %v3009_v1, %v2580_v2  ;;  %v924_v23 = vmul.f32 %v3039_v31, %v2575_v59  ;;  %v925_v16 = vmul.f32 %v3042_v33, %v2575_v59  ;;  %v1062_v1 = vld [vmem:[#allocation2 + $0xc8] sm:$0xff] }
 0x1a5   : > { %1868 = vmatprep.mubr.bf16.mxu1 %v1280_v0  ;;  %v1215_v9 = vadd.f32 %v1199_v30, %v1147_v53  ;;  %v1216_v52 = vadd.f32 %v1200_v34, %v1148_v54  ;;  %v976_v5 = vmul.f32 %v2547_v40, %v2788_v11  ;;  %v977_v10 = vmul.f32 %v2547_v40, %v2811_v55 }
 0x1a6   : > { %v887_v25 = vadd.f32 %v871_v51, %v799_v29  ;;  %v888_v36 = vadd.f32 %v872_v35, %v800_v50  ;;  %v940_v8 = vadd.f32 %v924_v23, %v835_v20  ;;  %v941_v17 = vadd.f32 %v925_v16, %v836_v63  ;;  %v1063_v16 = vld [vmem:[#allocation2 + $0xd8] sm:$0xff] }
 0x1a7   : > { %v1238_v32 = vadd.f32 %v2802_v7, %v1215_v9  ;;  %v1239_v24 = vadd.f32 %v2802_v7, %v1216_v52  ;;  %v1028_v26 = vmul.f32 %v3051_v19, %v2582_v3  ;;  %v1029_v11 = vmul.f32 %v3053_v45, %v2582_v3 }
 0x1a8   : > { %v992_v43 = vadd.f32 %v976_v5, %v887_v25  ;;  %v993_v14 = vadd.f32 %v977_v10, %v888_v36  ;;  %v1081_v13 = vmul.f32 %v2597_v12, %v1061_v60  ;;  %v1082_v37 = vmul.f32 %v2597_v12, %v1062_v1  ;;  %v1116_v36 = vld [vmem:[#allocation2 + $0xe1] sm:$0xff] }
 0x1a9   : > { %v1254_v27 = vmax.f32 %v1238_v32, 0.0  ;;  %v1255_v21 = vmax.f32 %v1239_v24, 0.0  ;;  %v1044_v55 = vadd.f32 %v1028_v26, %v940_v8  ;;  %v1045_v56 = vadd.f32 %v1029_v11, %v941_v17  ;;  %v1168_v17 = vld [vmem:[#allocation2 + $0xe2] sm:$0xff] }
 0x1aa   : > { %v1097_v44 = vadd.f32 %v1081_v13, %v992_v43  ;;  %v1133_v18 = vmul.f32 %v2584_v4, %v2855_v57  ;;  %v1134_v58 = vmul.f32 %v2584_v4, %v2875_v22  ;;  %v1098_v49 = vadd.f32 %v1082_v37, %v993_v14 }
 0x1ab   : > { %v1270_v42 = vmin.f32 %v1254_v27, 6.0  ;;  %v1271_v47 = vmin.f32 %v1255_v21, 6.0  ;;  %v1185_v62 = vmul.f32 %v2754_v6, %v1165_v61  ;;  %v1186_v53 = vmul.f32 %v2754_v6, %v1166_v38 }
 0x1ac   : > { %v1149_v46 = vadd.f32 %v1133_v18, %v1044_v55  ;;  %v1150_v15 = vadd.f32 %v1134_v58, %v1045_v56  ;;  %v801_v54 = vmul.f32 %v3039_v31, %v2558_v48  ;;  %v802_v0 = vmul.f32 %v3042_v33, %v2558_v48 }
 0x1ad   : > { %v1281_v29 = vpack.c.bf16 %v1271_v47, %v1270_v42  ;;  %v1201_v50 = vadd.f32 %v1185_v62, %v1097_v44  ;;  %v837_v30 = vmul.f32 %v2545_v39, %v817_v41  ;;  %v1202_v34 = vadd.f32 %v1186_v53, %v1098_v49 }
 0x1ae   : > { %v838_v20 = vmul.f32 %v2545_v39, %v818_v28  ;;  %v873_v63 = vmul.f32 %v3051_v19, %v2580_v2  ;;  %v874_v51 = vmul.f32 %v3053_v45, %v2580_v2  ;;  %v926_v31 = vmul.f32 %v1061_v60, %v2575_v59  ;;  %v1064_v19 = vld [vmem:[#allocation2 + $0xe0] sm:$0xff] }
 0x1af   : > { %1869 = vmatmul.mubr.bf16.gmra.mxu1 %v1281_v29  ;;  %v1217_v35 = vadd.f32 %v1201_v50, %v1149_v46  ;;  %v927_v23 = vmul.f32 %v1062_v1, %v2575_v59  ;;  %v978_v48 = vmul.f32 %v2547_v40, %v2855_v57  ;;  %v1218_v33 = vadd.f32 %v1202_v34, %v1150_v15  ;;  %v1115_v60 = vld [vmem:[#allocation2 + $0xd9] sm:$0xff]  ;;  %v1766_v15 = vld [vmem:[%s2522_s16 + $0x8] sm:$0xff]  }
 0x1b0   : > { %v889_v9 = vadd.f32 %v873_v63, %v801_v54  ;;  %v890_v52 = vadd.f32 %v874_v51, %v802_v0  ;;  %v979_v39 = vmul.f32 %v2547_v40, %v2875_v22  ;;  %v942_v2 = vadd.f32 %v926_v31, %v837_v30  ;;  %v1167_v1 = vld [vmem:[#allocation2 + $0xda] sm:$0xff] }
 0x1b1   : > { %v1240_v5 = vadd.f32 %v2802_v7, %v1217_v35  ;;  %v943_v45 = vadd.f32 %v927_v23, %v838_v20  ;;  %v1030_v25 = vmul.f32 %v1165_v61, %v2582_v3  ;;  %v1241_v59 = vadd.f32 %v2802_v7, %v1218_v33  ;;  %v3132_v46 = vld [vmem:[%s3255_s6] ss:$0 sm:$0xff] }
 0x1b2   : > { %v994_v8 = vadd.f32 %v978_v48, %v889_v9  ;;  %v995_v57 = vadd.f32 %v979_v39, %v890_v52  ;;  %v1031_v10 = vmul.f32 %v1166_v38, %v2582_v3  ;;  %v1083_v40 = vmul.f32 %v2597_v12, %v1063_v16  ;;  %v1769_v9 = vld [vmem:[%s2522_s16 + $0x20] sm:$0xff]   ;;  %v1768_v52 = vld [vmem:[%s2522_s16 + $0x18] sm:$0xff]  }
 0x1b3   : > { %v1256_v32 = vmax.f32 %v1240_v5, 0.0  ;;  %v1046_v24 = vadd.f32 %v1030_v25, %v942_v2  ;;  %v1084_v22 = vmul.f32 %v2597_v12, %v1064_v19  ;;  %v1257_v26 = vmax.f32 %v1241_v59, 0.0 }
 0x1b4   : > { %v1047_v43 = vadd.f32 %v1031_v10, %v943_v45  ;;  %v1135_v14 = vmul.f32 %v2584_v4, %v1115_v60  ;;  %v1136_v11 = vmul.f32 %v2584_v4, %v1116_v36  ;;  %v1099_v61 = vadd.f32 %v1083_v40, %v994_v8  ;;  %v1771_v40 = vld [vmem:[%s2522_s16 + $0x30] sm:$0xff]  }
 0x1b5   : > { %v1272_v13 = vmin.f32 %v1256_v32, 6.0  ;;  %v1100_v27 = vadd.f32 %v1084_v22, %v995_v57  ;;  %v1187_v21 = vmul.f32 %v2754_v6, %v1167_v1  ;;  %v1273_v3 = vmin.f32 %v1257_v26, 6.0  ;;  %v1770_v22 = vld [vmem:[%s2522_s16 + $0x28] sm:$0xff]  }
 0x1b6   : > { %v1151_v55 = vadd.f32 %v1135_v14, %v1046_v24  ;;  %v1152_v37 = vadd.f32 %v1136_v11, %v1047_v43  ;;  %v1188_v38 = vmul.f32 %v2754_v6, %v1168_v17  ;;  %v1767_v6 = vld [vmem:[%s2522_s16 + $0x10] sm:$0xff]   ;;  %v1736_v29 = vunpack.c.l.bf16 %v1766_v15 }
 0x1b7   : > { %v1203_v12 = vadd.f32 %v1187_v21, %v1099_v61  ;;  %v1282_v56 = vpack.c.bf16 %v1273_v3, %v1272_v13  ;;  %v1740_v53 = vunpack.c.l.bf16 %v1767_v6  ;;  %v1741_v34 = vunpack.c.h.bf16 %v1767_v6 }
 0x1b8   : > { %v1204_v44 = vadd.f32 %v1188_v38, %v1100_v27  ;;  %v1737_v35 = vunpack.c.h.bf16 %v1766_v15  ;;  %v1748_v39 = vunpack.c.l.bf16 %v1769_v9  ;;  %v1744_v5 = vunpack.c.l.bf16 %v1768_v52 }
 0x1b9   : > { %v1219_v18 = vadd.f32 %v1203_v12, %v1151_v55  ;;  %1872 = vmatprep.mubr.bf16.mxu1 %v1282_v56  ;;  %v1749_v60 = vunpack.c.h.bf16 %v1769_v9  ;;  %v1745_v57 = vunpack.c.h.bf16 %v1768_v52  ;;  %v1756_v17 = vunpack.c.l.bf16 %v1771_v40 }
 0x1ba   : > { %v1220_v4 = vadd.f32 %v1204_v44, %v1152_v37  ;;  %v1752_v14 = vunpack.c.l.bf16 %v1770_v22  ;;  %v1757_v27 = vunpack.c.h.bf16 %v1771_v40  ;;  %v1753_v37 = vunpack.c.h.bf16 %v1770_v22 }
 0x1bb   : > { %v1242_v58 = vadd.f32 %v2802_v7, %v1219_v18  ;;  %v1773_v18 = vld [vmem:[%s2522_s16 + $0x40] sm:$0xff]  }
 0x1bc   : > { %v1243_v41 = vadd.f32 %v2802_v7, %v1220_v4  ;;  %v1772_v4 = vld [vmem:[%s2522_s16 + $0x38] sm:$0xff]   ;;  %v1765_v6 = vunpack.c.h.bf16 %v1773_v18 }
 0x1bd   : > { %v1258_v42 = vmax.f32 %v1242_v58, 0.0  ;;  %v1764_v58 = vunpack.c.l.bf16 %v1773_v18 }
 0x1be   : > { %v1259_v47 = vmax.f32 %v1243_v41, 0.0 }
 0x1bf   : > { %v1274_v49 = vmin.f32 %v1258_v42, 6.0 }
 0x1c0   : > { %v1275_v62 = vmin.f32 %v1259_v47, 6.0  ;;  %v1760_v47 = vunpack.c.l.bf16 %v1772_v4 }
 0x1c2   : > { %v1283_v28 = vpack.c.bf16 %v1275_v62, %v1274_v49 }
 0x1c4   : > { %1873 = vmatmul.mubr.bf16.gmra.mxu1 %v1283_v28 }
 0x247   : > { %v1862_v54 = vpop.f32.mrf.mxu1 }
 0x248   : > { %v1398_v7 = vadd.f32 %v1862_v54, %v3132_v46 }
 0x249   : > { %v1389_v50 = vpop.f32.mrf.mxu1 }
 0x24a   : > { %v1490_v0 = vadd.f32 %v1740_v53, %v1398_v7  ;;  %v1390_v30 = vadd.f32 %v3132_v46, %v1389_v50  ;;  %v1761_v7 = vunpack.c.h.bf16 %v1772_v4 }
 0x24b   : > { %v1863_v20 = vpop.f32.mrf.mxu1 }
 0x24c   : > { %1506 = vst [vmem:[%s3139_s5 + $0x10] sm:$0xff] %v1490_v0  ;;  %v1488_v63 = vadd.f32 %v1736_v29, %v1390_v30  ;;  %v1401_v51 = vadd.f32 %v1863_v20, %v3132_v46 }
 0x24d   : > { %v1392_v31 = vpop.f32.mrf.mxu1 }
 0x24e   : > { %1504 = vst [vmem:[%s3139_s5] sm:$0xff] %v1488_v63  ;;  %v1491_v23 = vadd.f32 %v1741_v34, %v1401_v51  ;;  %v1393_v48 = vadd.f32 %v3132_v46, %v1392_v31 }
 0x250   : > { %1507 = vst [vmem:[%s3139_s5 + $0x18] sm:$0xff] %v1491_v23  ;;  %v1489_v33 = vadd.f32 %v1737_v35, %v1393_v48 }
 0x252   : > { %1505 = vst [vmem:[%s3139_s5 + $0x8] sm:$0xff] %v1489_v33 }
 0x25b   : > { %v1866_v16 = vpop.f32.mrf.mxu1 }
 0x25c   : > { %v1414_v19 = vadd.f32 %v1866_v16, %v3132_v46 }
 0x25d   : > { %v1405_v2 = vpop.f32.mrf.mxu1 }
 0x25e   : > { %v1494_v45 = vadd.f32 %v1748_v39, %v1414_v19  ;;  %v1406_v25 = vadd.f32 %v3132_v46, %v1405_v2 }
 0x25f   : > { %v1867_v36 = vpop.f32.mrf.mxu1 }
 0x260   : > { %1510 = vst [vmem:[%s3139_s5 + $0x30] sm:$0xff] %v1494_v45  ;;  %v1492_v59 = vadd.f32 %v1744_v5, %v1406_v25  ;;  %v1417_v8 = vadd.f32 %v1867_v36, %v3132_v46 }
 0x261   : > { %v1408_v10 = vpop.f32.mrf.mxu1 }
 0x262   : > { %1508 = vst [vmem:[%s3139_s5 + $0x20] sm:$0xff] %v1492_v59  ;;  %v1495_v1 = vadd.f32 %v1749_v60, %v1417_v8  ;;  %v1409_v32 = vadd.f32 %v3132_v46, %v1408_v10 }
 0x264   : > { %1511 = vst [vmem:[%s3139_s5 + $0x38] sm:$0xff] %v1495_v1  ;;  %v1493_v24 = vadd.f32 %v1745_v57, %v1409_v32 }
 0x266   : > { %1509 = vst [vmem:[%s3139_s5 + $0x28] sm:$0xff] %v1493_v24 }
 0x26f   : > { %v1870_v26 = vpop.f32.mrf.mxu1 }
 0x270   : > { %v1430_v43 = vadd.f32 %v1870_v26, %v3132_v46 }
 0x271   : > { %v1421_v11 = vpop.f32.mrf.mxu1 }
 0x272   : > { %v1498_v13 = vadd.f32 %v1756_v17, %v1430_v43  ;;  %v1422_v61 = vadd.f32 %v3132_v46, %v1421_v11 }
 0x273   : > { %v1871_v21 = vpop.f32.mrf.mxu1 }
 0x274   : > { %1514 = vst [vmem:[%s3139_s5 + $0x50] sm:$0xff] %v1498_v13  ;;  %v1496_v3 = vadd.f32 %v1752_v14, %v1422_v61  ;;  %v1433_v55 = vadd.f32 %v1871_v21, %v3132_v46 }
 0x275   : > { %v1424_v38 = vpop.f32.mrf.mxu1 }
 0x276   : > { %1512 = vst [vmem:[%s3139_s5 + $0x40] sm:$0xff] %v1496_v3  ;;  %v1499_v12 = vadd.f32 %v1757_v27, %v1433_v55  ;;  %v1425_v56 = vadd.f32 %v3132_v46, %v1424_v38 }
 0x278   : > { %1515 = vst [vmem:[%s3139_s5 + $0x58] sm:$0xff] %v1499_v12  ;;  %v1497_v44 = vadd.f32 %v1753_v37, %v1425_v56 }
 0x27a   : > { %1513 = vst [vmem:[%s3139_s5 + $0x48] sm:$0xff] %v1497_v44 }
 0x284   : > { %v1874_v41 = vpop.f32.mrf.mxu1 }
 0x285   : > { %v1446_v42 = vadd.f32 %v1874_v41, %v3132_v46 }
 0x286   : > { %v1437_v49 = vpop.f32.mrf.mxu1 }
 0x287   : > { %v1502_v62 = vadd.f32 %v1764_v58, %v1446_v42  ;;  %v1438_v28 = vadd.f32 %v3132_v46, %v1437_v49 }
 0x288   : > { %v1875_v15 = vpop.f32.mrf.mxu1 }
 0x289   : > { %1518 = vst [vmem:[%s3139_s5 + $0x70] sm:$0xff] %v1502_v62  ;;  %v1500_v53 = vadd.f32 %v1760_v47, %v1438_v28  ;;  %v1449_v54 = vadd.f32 %v1875_v15, %v3132_v46 }
 0x28a   : > { %v1440_v29 = vpop.f32.mrf.mxu1 }
 0x28b   : > { %1516 = vst [vmem:[%s3139_s5 + $0x60] sm:$0xff] %v1500_v53  ;;  %v1503_v50 = vadd.f32 %v1765_v6, %v1449_v54  ;;  %v1441_v0 = vadd.f32 %v3132_v46, %v1440_v29 }
 0x28d   : > { %1519 = vst [vmem:[%s3139_s5 + $0x78] sm:$0xff] %v1503_v50  ;;  %v1501_v30 = vadd.f32 %v1761_v7, %v1441_v0 }
 0x28f   : > { %1517 = vst [vmem:[%s3139_s5 + $0x68] sm:$0xff] %v1501_v30 }
 0x290   : > { %2164 = shalt.err (!%p2161_p12)
}
 0x291   : > { %s2165_s27 = scalar_lea.hbm %s3181_s19, 2048  ;;  %s2169_s9 = scalar_lea.hbm %s3315_s14, 8192 }
 0x292   : > { %p2166_p0 = scmp.ne.s32.totalorder %s3181_s19, %s2165_s27  ;;  %p2170_p5 = scmp.lt.s32.totalorder %s3181_s19, %s3315_s14 }
 0x293   : > { %p2171_p8 = scmp.lt.s32.totalorder %s2169_s9, %s2165_s27 }
 0x294   : > { %p2167_p2 = pnand %p2166_p0, %p3316_p3 }
 0x295   : > { %p2172_p10 = por %p2171_p8, %p2170_p5 }
 0x296   : > { %p2168_p4 = pneg %p2167_p2 }
 0x298   : > { %p2173_p1 = pnand %p2172_p10, %p2168_p4 }
 0x29a   : > { %2176 = shalt.err (!%p2173_p1)
}
 0x29b   : > { %s2291_s21 = smov 128   ;;  %s2292_s23 = smov 8  }
 0x29c   : > { %1893 = dma.vmem_to_hbm [thread:$0]  (%p3316_p3), %s3183_s7, 2048, %s3181_s19, %s3189_s17, %s2291_s21, %s2291_s21, %s2292_s23  }
 0x29d PF: > { %s3317_s8 = sld [smem:[#allocation16_spill]]  ;;  %p1920_p7 = scmp.ge.s32.totalorder %s2279_s11, 2 }
 0x29e   : > { %s3318_s16 = sld [smem:[#allocation20_spill]] }
 0x2a3   : > { %s1552_s18 = sand.u32 1, %s3317_s8  }
 0x2a4   : > { %p3319_p9 = scmp.ne.s32.totalorder %s3318_s16, 0  ;;  %s1553_s24 = scalar_lea.sflag [#allocation5], %s1552_s18 }
 0x2a6   : > { %p1910_p11 = pnand %p1920_p7, %p3319_p9 }
 0x2a8   : > { %p1911_p6 = pneg %p1910_p11 }
 0x2aa   : > { %2234 = dma.done.wait (%p1911_p6), %s1553_s24, 2048  }
 0x2ab   : > { %2236 = vsyncadd (%p1911_p6), %s1553_s24, 4294965248  ;;  %s25_s11 = sadd.s32 1, %s2279_s11   ;;  %s3320_s30 = sld [smem:[#allocation18_spill]] }
 0x2ac   : > { %p22_p13 = scmp.ge.s32.totalorder %s25_s11, 6   ;;  %s3321_s9 = sld [smem:[#allocation21_spill]] }
 0x2ad   : > { %s3322_s7 = sld [smem:[#allocation22_spill]]  ;;  %s3323_s24 = smov %s2243_s25 }
 0x2ae   : > { %s3324_s25 = smov %s2247_s26  ;;  %s3325_s26 = smov %s2486_s1 }
 0x2af   : > { %s3326_s27 = smov %s2255_s28  ;;  %s3327_s28 = smov %s2259_s29 }
 0x2b0   : > { %s3328_s29 = smov %s2481_s13  ;;  %s3329_s8 = smov %s2275_s10 }
 0x2b1   :  { %24 = sbr.rel (!%p22_p13) target bundleno = 16 (0x10), region = 109 }
 0x2b3   : > { %s3330_s10 = smov %s3322_s7 }
 0x2b6   :  { %1558 = vsyncpa [#allocation4], 1 }
 0x2b7   :  { %1560 = vsyncpa [#allocation4 + $0x1], 1 }
 0x2b8   :  { %1561 = vsyncpa [#allocation7], 1 }
 0x2b9   :  { %1562 = vsyncpa [#allocation10], 1 }
 0x2ba   :  { %1563 = vsyncpa [#allocation5], 1 }
 0x2bb   :  { %1565 = vsyncpa [#allocation5 + $0x1], 1 }

</bundles_post_ra>
